<compile_context>
chip_gen: v7x
topology: tpu7x:2x2x1
jax: 0.10.0
libtpu: 0.0.40
codegen_flags: <defaults>
</compile_context>

<pallas_src>
import jax
import jax.numpy as jnp
from jax.experimental import pallas as pl
from jax.experimental.pallas import tpu as pltpu

HIDDEN = 256
_ROW_ALIGN = 16  # bf16 packs 2 rows per sublane -> keep batch tiles 16-aligned


def _discriminator_kernel(x_ref, w1_ref, b1_ref, w2_ref, b2_ref, o_ref):
    # x_ref:  (tm, D)     bf16 batch tile of flattened input (pipelined stream)
    # w1_ref: (D, 256)    bf16 first linear weight, (in, out) layout (resident)
    # b1_ref: (1, 256)    f32
    # w2_ref: (1, 256)    f32 second linear weight as a single row (resident)
    # b2_ref: (1, 1)      f32 scalar bias in SMEM
    # o_ref:  (1, 1, tm)  f32 lane-dense output row for this tile

    # Linear 1 on the MXU: bf16 operands, f32 accumulation.
    h = jnp.dot(x_ref[...], w1_ref[...], preferred_element_type=jnp.float32)
    h = h + b1_ref[...]
    h = jnp.maximum(h, 0.2 * h)  # LeakyReLU(0.2) on the VPU

    # Linear 2 (N=1): VPU multiply + lane reduction (keeps the MXU free).
    z = jnp.sum(h * w2_ref[...], axis=-1) + b2_ref[0, 0]          # (tm,) f32

    # Lane-dense row, then numerically stable sigmoid (one EUP exp, no inf).
    z = z.reshape(1, 1, -1)                                        # (1, 1, tm)
    e = jnp.exp(-jnp.abs(z))
    p = jnp.where(z >= 0, 1.0, e) / (1.0 + e)
    o_ref[...] = p.astype(o_ref.dtype)


def _round_up(x, m):
    return (x + m - 1) // m * m


def _pick_batch_tile(batch, tm):
    """Batch tile: <= tm, 16-row aligned, and >= 2 grid steps when possible."""
    tm_eff = min(tm, _round_up(batch, _ROW_ALIGN))
    if batch >= 2 * _ROW_ALIGN:
        # Keep at least two grid steps so v7x's two TensorCores both get work
        # (dimension_semantics=("parallel",)) and tail padding stays small.
        tm_eff = min(tm_eff, _round_up(pl.cdiv(batch, 2), _ROW_ALIGN))
    return max(tm_eff, _ROW_ALIGN)


def discriminator_forward(x_nchw, w1_t, b1, w2, b2, *, tm=1024):
    """x_nchw: (B, C, 7, 7) f32. Returns (B, 1) f32 in [0, 1].

    w1_t: (C*7*7, 256)  transposed torch weight
    b1:   (256,)
    w2:   (1, 256)      torch layout (out, in)
    b2:   (1,)
    """
    B = x_nchw.shape[0]
    D = x_nchw.shape[1] * x_nchw.shape[2] * x_nchw.shape[3]
    x = x_nchw.reshape(B, D)  # same as torch .view(B, -1) (row-major)

    tm_eff = _pick_batch_tile(B, tm)
    b_pad = _round_up(B, tm_eff)
    grid = (b_pad // tm_eff,)

    # bf16 MXU operands (f32 accumulate in-kernel): halves HBM traffic for x.
    x_bf = x.astype(jnp.bfloat16)
    if b_pad != B:
        x_bf = jnp.pad(x_bf, ((0, b_pad - B), (0, 0)))
    w1_bf = w1_t.astype(jnp.bfloat16)

    b1_2d = b1.reshape(1, HIDDEN).astype(jnp.float32)
    w2_2d = w2.reshape(1, HIDDEN).astype(jnp.float32)
    b2_2d = b2.reshape(1, 1).astype(jnp.float32)

    out = pl.pallas_call(
        _discriminator_kernel,
        out_shape=jax.ShapeDtypeStruct((grid[0], 1, tm_eff), jnp.float32),
        grid_spec=pltpu.PrefetchScalarGridSpec(
            num_scalar_prefetch=0,
            grid=grid,
            in_specs=[
                # x: batch-tiled, double-buffered stream (D kept as full block).
                pl.BlockSpec((tm_eff, D), lambda i: (i, 0)),
                # weights / biases: constant index_map -> VMEM-resident.
                pl.BlockSpec((D, HIDDEN), lambda i: (0, 0)),
                pl.BlockSpec((1, HIDDEN), lambda i: (0, 0)),
                pl.BlockSpec((1, HIDDEN), lambda i: (0, 0)),
                # scalar second bias lives in SMEM.
                pl.BlockSpec(memory_space=pltpu.MemorySpace.SMEM),
            ],
            # Lane-dense output: one (1, 1, tm) row per grid step.
            out_specs=pl.BlockSpec((1, 1, tm_eff), lambda i: (i, 0, 0)),
        ),
        compiler_params=pltpu.CompilerParams(
            # Independent rows -> shard the batch grid across TCs (v7x megacore).
            dimension_semantics=("parallel",),
            # ~17 MiB working set at tm=1024 bf16; 48 MiB is safe on v7x's
            # 64 MiB VMEM and overrides v5e's 16 MiB default scoped limit.
            vmem_limit_bytes=48 << 20,
        ),
    )(x_bf, w1_bf, b1_2d, w2_2d, b2_2d)

    return out.reshape(b_pad, 1)[:B]


def init_params(key, image_channels):
    """Matches the module's init_weights: weight ~ Normal(0, 0.02), bias = 0."""
    in_features = image_channels * 7 * 7
    k1, k2 = jax.random.split(key)
    # PyTorch stores Linear weight as (out, in); pre-transpose w1 to (in, out).
    w1_t = (jax.random.normal(k1, (256, in_features), jnp.float32) * 0.02).T
    b1 = jnp.zeros((256,), jnp.float32)
    w2 = jax.random.normal(k2, (1, 256), jnp.float32) * 0.02  # torch layout
    b2 = jnp.zeros((1,), jnp.float32)
    return w1_t, b1, w2, b2


def reference_forward(x_nchw, w1_t, b1, w2, b2, *, matmul_dtype=jnp.float32):
    x = x_nchw.reshape(x_nchw.shape[0], -1)
    h = jnp.dot(x.astype(matmul_dtype), w1_t.astype(matmul_dtype),
                preferred_element_type=jnp.float32) + b1
    h = jnp.maximum(h, 0.2 * h)
    z = h @ w2.T + b2
    return jax.nn.sigmoid(z)


if __name__ == "__main__":
    # Small but shape-consistent config: image_channels=64 -> 64*7*7 = 3136 features.
    image_channels = 64
    batch = 2

    key = jax.random.PRNGKey(0)
    k_params, k_x = jax.random.split(key)

    w1_t, b1, w2, b2 = init_params(k_params, image_channels)
    x = jax.random.normal(k_x, (batch, image_channels, 7, 7), jnp.float32)

    out = jax.block_until_ready(discriminator_forward(x, w1_t, b1, w2, b2))
    assert out.shape == (batch, 1), out.shape

    # Tight check against a reference using the same bf16 MXU operands.
    ref_bf16 = reference_forward(x, w1_t, b1, w2, b2, matmul_dtype=jnp.bfloat16)
    assert jnp.allclose(out, ref_bf16, atol=2e-3, rtol=2e-3), (out, ref_bf16)

    # Loosened check against the full-f32 torch-equivalent reference
    # (bf16 MXU inputs break 1e-5 parity by design).
    ref_f32 = reference_forward(x, w1_t, b1, w2, b2, matmul_dtype=jnp.float32)
    assert jnp.allclose(out, ref_f32, atol=3e-2, rtol=3e-2), (out, ref_f32)

    print("KERNEL_OK")
</pallas_src>

<mosaic_0001>
module attributes {stable_mosaic.version = 11 : i64} {
  func.func @_discriminator_kernel(%arg0: i32, %arg1: memref<16x3136xbf16, #tpu.memory_space<vmem>>, %arg2: memref<3136x256xbf16, #tpu.memory_space<vmem>>, %arg3: memref<1x256xf32, #tpu.memory_space<vmem>>, %arg4: memref<1x256xf32, #tpu.memory_space<vmem>>, %arg5: memref<1x1xf32, #tpu.memory_space<smem>>, %arg6: memref<1x1x16xf32, #tpu.memory_space<vmem>>) attributes {dimension_semantics = [#tpu.dimension_semantics<parallel>], iteration_bounds = array<i64: 1>, scalar_prefetch = 0 : i64, scratch_operands = 0 : i64, tpu.core_type = #tpu.core_type<tc>, window_params = [{transform_indices = @transform_0, window_bounds = array<i64: 16, 3136>}, {pipeline_mode = #tpu.pipeline_mode<synchronous>, transform_indices = @transform_1, window_bounds = array<i64: 3136, 256>}, {pipeline_mode = #tpu.pipeline_mode<synchronous>, transform_indices = @transform_2, window_bounds = array<i64: 1, 256>}, {pipeline_mode = #tpu.pipeline_mode<synchronous>, transform_indices = @transform_3, window_bounds = array<i64: 1, 256>}, {transform_indices = @transform_4, window_bounds = array<i64: 1, 1>}, {transform_indices = @transform_5, window_bounds = array<i64: 1, 1, 16>}]} {
    %c0 = arith.constant 0 : index
    %c0_0 = arith.constant 0 : index
    %0 = vector.load %arg1[%c0, %c0_0] : memref<16x3136xbf16, #tpu.memory_space<vmem>>, vector<16x3136xbf16>
    %c0_1 = arith.constant 0 : index
    %c0_2 = arith.constant 0 : index
    %1 = vector.load %arg2[%c0_1, %c0_2] : memref<3136x256xbf16, #tpu.memory_space<vmem>>, vector<3136x256xbf16>
    %cst = arith.constant dense<0.000000e+00> : vector<16x256xf32>
    %2 = tpu.matmul %0, %1, %cst {dimension_numbers = #tpu.dot_dimension_numbers<[1], [0], [0], [1], [0, 0, 1, 1], [], []>} : vector<16x3136xbf16>, vector<3136x256xbf16>, vector<16x256xf32> -> vector<16x256xf32>
    %c0_3 = arith.constant 0 : index
    %c0_4 = arith.constant 0 : index
    %3 = vector.load %arg3[%c0_3, %c0_4] : memref<1x256xf32, #tpu.memory_space<vmem>>, vector<1x256xf32>
    %4 = vector.broadcast %3 : vector<1x256xf32> to vector<16x256xf32>
    %5 = arith.addf %2, %4 : vector<16x256xf32>
    %cst_5 = arith.constant 2.000000e-01 : f32
    %6 = vector.broadcast %cst_5 : f32 to vector<16x256xf32>
    %7 = arith.mulf %6, %5 : vector<16x256xf32>
    %8 = arith.maximumf %5, %7 : vector<16x256xf32>
    %c0_6 = arith.constant 0 : index
    %c0_7 = arith.constant 0 : index
    %9 = vector.load %arg4[%c0_6, %c0_7] : memref<1x256xf32, #tpu.memory_space<vmem>>, vector<1x256xf32>
    %10 = vector.broadcast %9 : vector<1x256xf32> to vector<16x256xf32>
    %11 = arith.mulf %8, %10 : vector<16x256xf32>
    %cst_8 = arith.constant dense<0.000000e+00> : vector<16xf32>
    %12 = vector.multi_reduction <add>, %11, %cst_8 [1] : vector<16x256xf32> to vector<16xf32>
    %c0_9 = arith.constant 0 : index
    %c0_10 = arith.constant 0 : index
    %13 = memref.load %arg5[%c0_9, %c0_10] : memref<1x1xf32, #tpu.memory_space<smem>>
    %14 = vector.broadcast %13 : f32 to vector<16xf32>
    %15 = arith.addf %12, %14 : vector<16xf32>
    %16 = vector.shape_cast %15 : vector<16xf32> to vector<1x1x16xf32>
    %17 = math.absf %16 : vector<1x1x16xf32>
    %cst_11 = arith.constant 0.000000e+00 : f32
    %18 = vector.broadcast %cst_11 : f32 to vector<1x1x16xf32>
    %19 = arith.subf %18, %17 : vector<1x1x16xf32>
    %20 = math.exp %19 : vector<1x1x16xf32>
    %cst_12 = arith.constant 0.000000e+00 : f32
    %21 = vector.broadcast %cst_12 : f32 to vector<1x1x16xf32>
    %22 = arith.cmpf oge, %16, %21 : vector<1x1x16xf32>
    %cst_13 = arith.constant 1.000000e+00 : f32
    %23 = vector.broadcast %cst_13 : f32 to vector<1x1x16xf32>
    %24 = arith.select %22, %23, %20 : vector<1x1x16xi1>, vector<1x1x16xf32>
    %cst_14 = arith.constant 1.000000e+00 : f32
    %25 = vector.broadcast %cst_14 : f32 to vector<1x1x16xf32>
    %26 = arith.addf %25, %20 : vector<1x1x16xf32>
    %27 = arith.divf %24, %26 : vector<1x1x16xf32>
    %c0_15 = arith.constant 0 : index
    %c0_16 = arith.constant 0 : index
    %c0_17 = arith.constant 0 : index
    %28 = vector.load %arg6[%c0_15, %c0_16, %c0_17] : memref<1x1x16xf32, #tpu.memory_space<vmem>>, vector<1x1x16xf32>
    tpu.vector_store %arg6[%c0_15, %c0_16, %c0_17], %27 {strides = array<i32>} : memref<1x1x16xf32, #tpu.memory_space<vmem>>, vector<1x1x16xf32>,
    return
  }
  func.func @transform_0(%arg0: i32) -> (i32, i32) {
    %c0_i32 = arith.constant 0 : i32
    %c0_i32_0 = arith.constant 0 : i32
    return %arg0, %c0_i32 : i32, i32
  }
  func.func @transform_1(%arg0: i32) -> (i32, i32) {
    %c0_i32 = arith.constant 0 : i32
    %c0_i32_0 = arith.constant 0 : i32
    %c0_i32_1 = arith.constant 0 : i32
    return %c0_i32, %c0_i32_0 : i32, i32
  }
  func.func @transform_2(%arg0: i32) -> (i32, i32) {
    %c0_i32 = arith.constant 0 : i32
    %c0_i32_0 = arith.constant 0 : i32
    %c0_i32_1 = arith.constant 0 : i32
    return %c0_i32, %c0_i32_0 : i32, i32
  }
  func.func @transform_3(%arg0: i32) -> (i32, i32) {
    %c0_i32 = arith.constant 0 : i32
    %c0_i32_0 = arith.constant 0 : i32
    %c0_i32_1 = arith.constant 0 : i32
    return %c0_i32, %c0_i32_0 : i32, i32
  }
  func.func @transform_4(%arg0: i32) -> (i32, i32) {
    %c0_i32 = arith.constant 0 : i32
    %c0_i32_0 = arith.constant 0 : i32
    %c0_i32_1 = arith.constant 0 : i32
    return %c0_i32, %c0_i32_0 : i32, i32
  }
  func.func @transform_5(%arg0: i32) -> (i32, i32, i32) {
    %c0_i32 = arith.constant 0 : i32
    %c0_i32_0 = arith.constant 0 : i32
    %c0_i32_1 = arith.constant 0 : i32
    return %arg0, %c0_i32, %c0_i32_0 : i32, i32, i32
  }
}

</mosaic_0001>

<bundles_post_ra>
// kernel: tpu_custom_call.1
= control target key start
LH: loop header
LB: loop body
LE: loop exit
PB: predicated region body
PF: predicated region fallthrough
CT: control target
= control target key end

     0   :  { %11 = vsyncpa [#allocation4], 0  ;;  %s4579_s0 = inlined_call_operand.hbm [shape: bf16[16,3136], index: 0, kind: input, shape index: {}]   ;;  %s4580_s1 = inlined_call_operand.hbm [shape: bf16[3136,256], index: 1, kind: input, shape index: {}]   ;;  %s4581_s2 = inlined_call_operand.hbm [shape: f32[1,256], index: 2, kind: input, shape index: {}]   ;;  %s4582_s3 = inlined_call_operand.hbm [shape: f32[1,256], index: 3, kind: input, shape index: {}]   ;;  %s4583_s4 = inlined_call_operand.<no memory space> [shape: f32[1,1], index: 4, kind: input, shape index: {}]   ;;  %s4584_s5 = inlined_call_operand.hbm [shape: f32[1,1,16], index: 5, kind: output, shape index: {}]  }
   0x1   :  { %12 = vsyncpa [#allocation7], 0 }
   0x2   :  { %13 = vsyncpa [#allocation10], 0 }
   0x3   :  { %14 = vsyncpa [#allocation5], 0  ;;  %s4470_s18 = smov [#allocation6]   ;;  %s4352_s22 = scalar_lea.hbm %s4580_s1, 50176 }
   0x4   :  { %s32_s19 = sshll.u32 %s4470_s18, 4  ;;  %p4353_p0 = scmp.ne.s32.totalorder %s4580_s1, %s4352_s22  ;;  %s33_s19 = int_to_ptr.vmem [resolvable:$true] %s32_s19 }
   0x5   :  { %p4356_p1 = scmp.lt.u32.totalorder %s4352_s22, %s4580_s1 }
   0x7   :  { %p4358_p2 = pnand %p4356_p1, %p4353_p0 }
   0x9   :  { %4361 = shalt.err (!%p4358_p2)
}
   0xa   :  { %s4362_s27 = scalar_lea.vmem %s33_s19, 50176  ;;  %p4367_p4 = scmp.lt.s32.totalorder %s33_s19, %s33_s19 }
   0xb   :  { %p4363_p3 = scmp.ne.s32.totalorder %s33_s19, %s4362_s27  ;;  %p4368_p5 = scmp.lt.s32.totalorder %s4362_s27, %s4362_s27 }
   0xd   :  { %p4369_p6 = por %p4368_p5, %p4367_p4 }
   0xf   :  { %p4370_p7 = pnand %p4369_p6, %p4363_p3 }
  0x11   :  { %4373 = shalt.err (!%p4370_p7)
}
  0x12   :  { %s4471_s28 = smov 128   ;;  %s4472_s29 = smov 8  }
  0x13   :  { %38 = dma.hbm_to_vmem [thread:$0]  %s4580_s1, 50176, %s33_s19, [#allocation7], %s4471_s28, %s4471_s28, %s4472_s29  }
  0x14   :  { %s4473_s7 = smov [#allocation3]   ;;  %s4374_s11 = scalar_lea.hbm %s4579_s0, 3200 }
  0x15   :  { %s20_s8 = sshll.u32 %s4473_s7, 4  ;;  %p4375_p8 = scmp.ne.s32.totalorder %s4579_s0, %s4374_s11  ;;  %s21_s8 = int_to_ptr.vmem [resolvable:$true] %s20_s8 }
  0x16   :  { %p4378_p9 = scmp.lt.u32.totalorder %s4374_s11, %s4579_s0 }
  0x18   :  { %p4380_p10 = pnand %p4378_p9, %p4375_p8 }
  0x1a   :  { %4383 = shalt.err (!%p4380_p10)
}
  0x1b   :  { %s4384_s16 = scalar_lea.vmem %s21_s8, 3200  ;;  %p4389_p12 = scmp.lt.s32.totalorder %s21_s8, %s21_s8 }
  0x1c   :  { %p4385_p11 = scmp.ne.s32.totalorder %s21_s8, %s4384_s16  ;;  %p4390_p13 = scmp.lt.s32.totalorder %s4384_s16, %s4384_s16 }
  0x1e   :  { %p4391_p0 = por %p4390_p13, %p4389_p12 }
  0x20   :  { %p4392_p1 = pnand %p4391_p0, %p4385_p11 }
  0x22   :  { %4395 = shalt.err (!%p4392_p1)
}
  0x23   :  { %s4474_s1 = smov 1600   ;;  %s4475_s17 = smov 100  }
  0x24   :  { %26 = dma.hbm_to_vmem [thread:$0]  %s4579_s0, 3200, %s21_s8, [#allocation4], %s4474_s1, %s4474_s1, %s4475_s17  }
  0x25   :  { %s4476_s20 = smov [#allocation8]   ;;  %s4477_s22 = smov [#allocation9]  }
  0x26   :  { %s45_s21 = sshll.u32 %s4476_s20, 4  ;;  %s55_s23 = sshll.u32 %s4477_s22, 4  ;;  %s46_s21 = int_to_ptr.vmem [resolvable:$true] %s45_s21  ;;  %s56_s23 = int_to_ptr.vmem [resolvable:$true] %s55_s23 }
  0x27   :  { %s4396_s26 = scalar_lea.hbm %s4581_s2, 32 }
  0x28   :  { %p4397_p2 = scmp.ne.s32.totalorder %s4581_s2, %s4396_s26  ;;  %p4400_p3 = scmp.lt.u32.totalorder %s4396_s26, %s4581_s2 }
  0x2a   :  { %p4402_p4 = pnand %p4400_p3, %p4397_p2 }
  0x2c   :  { %4405 = shalt.err (!%p4402_p4)
}
  0x2d   :  { %s4406_s0 = scalar_lea.vmem %s46_s21, 32  ;;  %p4411_p6 = scmp.lt.s32.totalorder %s46_s21, %s46_s21 }
  0x2e   :  { %p4407_p5 = scmp.ne.s32.totalorder %s46_s21, %s4406_s0  ;;  %p4412_p7 = scmp.lt.s32.totalorder %s4406_s0, %s4406_s0 }
  0x30   :  { %p4413_p8 = por %p4412_p7, %p4411_p6 }
  0x32   :  { %p4414_p9 = pnand %p4413_p8, %p4407_p5 }
  0x34   :  { %4417 = shalt.err (!%p4414_p9)
}
  0x35   :  { %48 = dma.hbm_to_vmem [thread:$0]  %s4581_s2, 32, %s46_s21, [#allocation7]  }
  0x36   :  { %s4418_s10 = scalar_lea.hbm %s4582_s3, 32 }
  0x37   :  { %p4419_p10 = scmp.ne.s32.totalorder %s4582_s3, %s4418_s10  ;;  %p4422_p11 = scmp.lt.u32.totalorder %s4418_s10, %s4582_s3 }
  0x39   :  { %p4424_p12 = pnand %p4422_p11, %p4419_p10 }
  0x3b   :  { %4427 = shalt.err (!%p4424_p12)
}
  0x3c   :  { %s4428_s15 = scalar_lea.vmem %s56_s23, 32  ;;  %p4433_p0 = scmp.lt.s32.totalorder %s56_s23, %s56_s23 }
  0x3d   :  { %p4429_p13 = scmp.ne.s32.totalorder %s56_s23, %s4428_s15  ;;  %p4434_p1 = scmp.lt.s32.totalorder %s4428_s15, %s4428_s15 }
  0x3f   :  { %p4435_p2 = por %p4434_p1, %p4433_p0 }
  0x41   :  { %p4436_p3 = pnand %p4435_p2, %p4429_p13 }
  0x43   :  { %4439 = shalt.err (!%p4436_p3)
}
  0x44   :  { %58 = dma.hbm_to_vmem [thread:$0]  %s4582_s3, 32, %s56_s23, [#allocation10]  }
  0x45   :  { %4462 = dma.done.wait [#allocation4], 3200  }
  0x46   :  { %4463 = vsyncadd [#allocation4], 4294964096 }
  0x47   :  { %4464 = dma.done.wait [#allocation7], 50208  }
  0x48   :  { %4465 = vsyncadd [#allocation7], 4294917088 }
  0x49   :  { %4466 = dma.done.wait [#allocation10], 32  }
  0x4a   :  { %4467 = vsyncadd [#allocation10], 4294967264  ;;  %v3719_v0 = vld [vmem:[#allocation6 + $0x4] ss:$8 sps:$4 sm:$0xff]   ;;  %v3723_v2 = vld [vmem:[#allocation6] ss:$8 sps:$4 sm:$0xff]  }
  0x4b   :  { %v3721_v1 = vld [vmem:[#allocation6 + $0x604] ss:$8 sps:$4 sm:$0xff]   ;;  %2593 = vmatprep.subr.bf16.mxu1 %v3719_v0  ;;  %v3724_v3 = vld [vmem:[#allocation6 + $0x600] ss:$8 sps:$4 sm:$0xff]   ;;  %v3725_v4 = vld [vmem:[#allocation6 + $0x14] ss:$8 sps:$4 sm:$0xff]  }
  0x4c   :  { %2851 = vmatprep.subr.bf16.mxu0 %v3721_v1  ;;  %2594 = vmatpush1.bf16.msra.mxu1 %v3723_v2  ;;  %v3727_v5 = vld [vmem:[#allocation6 + $0x614] ss:$8 sps:$4 sm:$0xff]   ;;  %v3729_v6 = vld [vmem:[#allocation6 + $0x10] ss:$8 sps:$4 sm:$0xff]   ;;  %v3731_v8 = vld [vmem:[#allocation6 + $0x24] ss:$8 sps:$4 sm:$0xff]  }
  0x4d   :  { %2852 = vmatpush1.bf16.msra.mxu0 %v3724_v3  ;;  %2595 = vmatprep.subr.bf16.mxu1 %v3725_v4  ;;  %v3730_v7 = vld [vmem:[#allocation6 + $0x610] ss:$8 sps:$4 sm:$0xff]   ;;  %v3733_v9 = vld [vmem:[#allocation6 + $0x624] ss:$8 sps:$4 sm:$0xff]   ;;  %v3735_v10 = vld [vmem:[#allocation6 + $0x20] ss:$8 sps:$4 sm:$0xff]  }
  0x4e   :  { %2853 = vmatprep.subr.bf16.mxu0 %v3727_v5  ;;  %v3736_v11 = vld [vmem:[#allocation6 + $0x620] ss:$8 sps:$4 sm:$0xff]   ;;  %v3737_v12 = vld [vmem:[#allocation6 + $0x34] ss:$8 sps:$4 sm:$0xff]   ;;  %v3741_v14 = vld [vmem:[#allocation6 + $0x30] ss:$8 sps:$4 sm:$0xff]  }
  0x4f   :  { %v3739_v13 = vld [vmem:[#allocation6 + $0x634] ss:$8 sps:$4 sm:$0xff]   ;;  %v3742_v15 = vld [vmem:[#allocation6 + $0x630] ss:$8 sps:$4 sm:$0xff]   ;;  %v3743_v16 = vld [vmem:[#allocation6 + $0x44] ss:$8 sps:$4 sm:$0xff]  }
  0x50   :  { %2596 = vmatpush1.bf16.msra.mxu1 %v3729_v6  ;;  %v3745_v17 = vld [vmem:[#allocation6 + $0x644] ss:$8 sps:$4 sm:$0xff]   ;;  %v3747_v18 = vld [vmem:[#allocation6 + $0x40] ss:$8 sps:$4 sm:$0xff]   ;;  %v3749_v20 = vld [vmem:[#allocation6 + $0x54] ss:$8 sps:$4 sm:$0xff]  }
  0x51   :  { %2854 = vmatpush1.bf16.msra.mxu0 %v3730_v7  ;;  %2597 = vmatprep.subr.bf16.mxu1 %v3731_v8  ;;  %v3748_v19 = vld [vmem:[#allocation6 + $0x640] ss:$8 sps:$4 sm:$0xff]   ;;  %v3751_v21 = vld [vmem:[#allocation6 + $0x654] ss:$8 sps:$4 sm:$0xff]   ;;  %v3753_v22 = vld [vmem:[#allocation6 + $0x50] ss:$8 sps:$4 sm:$0xff]  }
  0x52   :  { %2855 = vmatprep.subr.bf16.mxu0 %v3733_v9  ;;  %v3754_v23 = vld [vmem:[#allocation6 + $0x650] ss:$8 sps:$4 sm:$0xff]   ;;  %v3755_v24 = vld [vmem:[#allocation6 + $0x64] ss:$8 sps:$4 sm:$0xff]   ;;  %v3759_v26 = vld [vmem:[#allocation6 + $0x60] ss:$8 sps:$4 sm:$0xff]  }
  0x53   :  { %v3757_v25 = vld [vmem:[#allocation6 + $0x664] ss:$8 sps:$4 sm:$0xff]   ;;  %v3760_v27 = vld [vmem:[#allocation6 + $0x660] ss:$8 sps:$4 sm:$0xff]   ;;  %v3761_v28 = vld [vmem:[#allocation6 + $0x74] ss:$8 sps:$4 sm:$0xff]  }
  0x54   :  { %2598 = vmatpush1.bf16.msra.mxu1 %v3735_v10  ;;  %v3763_v29 = vld [vmem:[#allocation6 + $0x674] ss:$8 sps:$4 sm:$0xff]   ;;  %v3765_v30 = vld [vmem:[#allocation6 + $0x70] ss:$8 sps:$4 sm:$0xff]   ;;  %v3767_v32 = vld [vmem:[#allocation6 + $0x84] ss:$8 sps:$4 sm:$0xff]  }
  0x55   :  { %2856 = vmatpush1.bf16.msra.mxu0 %v3736_v11  ;;  %2599 = vmatprep.subr.bf16.mxu1 %v3737_v12  ;;  %v3766_v31 = vld [vmem:[#allocation6 + $0x670] ss:$8 sps:$4 sm:$0xff]   ;;  %v3769_v33 = vld [vmem:[#allocation6 + $0x684] ss:$8 sps:$4 sm:$0xff]   ;;  %v3771_v34 = vld [vmem:[#allocation6 + $0x80] ss:$8 sps:$4 sm:$0xff]  }
  0x56   :  { %2857 = vmatprep.subr.bf16.mxu0 %v3739_v13  ;;  %v3772_v35 = vld [vmem:[#allocation6 + $0x680] ss:$8 sps:$4 sm:$0xff]   ;;  %v3773_v36 = vld [vmem:[#allocation6 + $0x94] ss:$8 sps:$4 sm:$0xff]   ;;  %v3777_v38 = vld [vmem:[#allocation6 + $0x90] ss:$8 sps:$4 sm:$0xff]  }
  0x57   :  { %v3775_v37 = vld [vmem:[#allocation6 + $0x694] ss:$8 sps:$4 sm:$0xff]   ;;  %v3778_v39 = vld [vmem:[#allocation6 + $0x690] ss:$8 sps:$4 sm:$0xff]   ;;  %v3779_v40 = vld [vmem:[#allocation6 + $0xa4] ss:$8 sps:$4 sm:$0xff]  }
  0x58   :  { %2600 = vmatpush1.bf16.msra.mxu1 %v3741_v14  ;;  %v3781_v41 = vld [vmem:[#allocation6 + $0x6a4] ss:$8 sps:$4 sm:$0xff]   ;;  %v3783_v42 = vld [vmem:[#allocation6 + $0xa0] ss:$8 sps:$4 sm:$0xff]   ;;  %v3785_v44 = vld [vmem:[#allocation6 + $0xb4] ss:$8 sps:$4 sm:$0xff]  }
  0x59   :  { %2858 = vmatpush1.bf16.msra.mxu0 %v3742_v15  ;;  %2601 = vmatprep.subr.bf16.mxu1 %v3743_v16  ;;  %v3784_v43 = vld [vmem:[#allocation6 + $0x6a0] ss:$8 sps:$4 sm:$0xff]   ;;  %v3787_v45 = vld [vmem:[#allocation6 + $0x6b4] ss:$8 sps:$4 sm:$0xff]   ;;  %v3789_v46 = vld [vmem:[#allocation6 + $0xb0] ss:$8 sps:$4 sm:$0xff]  }
  0x5a   :  { %2859 = vmatprep.subr.bf16.mxu0 %v3745_v17  ;;  %v3790_v47 = vld [vmem:[#allocation6 + $0x6b0] ss:$8 sps:$4 sm:$0xff]   ;;  %v3817_v48 = vld [vmem:[#allocation3 + $0x4] ss:$100 sps:$4 sm:$0xff]   ;;  %v3791_v49 = vld [vmem:[#allocation6 + $0xc4] ss:$8 sps:$4 sm:$0xff]  }
  0x5b   :  { %v3793_v50 = vld [vmem:[#allocation6 + $0x6c4] ss:$8 sps:$4 sm:$0xff]   ;;  %2625 = vmatprep.mubr.bf16.mxu1 %v3817_v48  ;;  %v3795_v52 = vld [vmem:[#allocation6 + $0xc0] ss:$8 sps:$4 sm:$0xff]   ;;  %v3797_v54 = vld [vmem:[#allocation6 + $0xd4] ss:$8 sps:$4 sm:$0xff]  }
  0x5c   :  { %2602 = vmatpush1.bf16.msra.mxu1 %v3747_v18  ;;  %v3823_v51 = vld [vmem:[#allocation3 + $0x34] ss:$100 sps:$4 sm:$0xff]   ;;  %v3796_v53 = vld [vmem:[#allocation6 + $0x6c0] ss:$8 sps:$4 sm:$0xff]   ;;  %v3799_v55 = vld [vmem:[#allocation6 + $0x6d4] ss:$8 sps:$4 sm:$0xff]  }
  0x5d   :  { %2860 = vmatpush1.bf16.msra.mxu0 %v3748_v19  ;;  %2603 = vmatprep.subr.bf16.mxu1 %v3749_v20  ;;  %v3801_v56 = vld [vmem:[#allocation6 + $0xd0] ss:$8 sps:$4 sm:$0xff]   ;;  %v3803_v58 = vld [vmem:[#allocation6 + $0xe4] ss:$8 sps:$4 sm:$0xff]   ;;  %v3807_v60 = vld [vmem:[#allocation6 + $0xe0] ss:$8 sps:$4 sm:$0xff]  }
  0x5e   :  { %2861 = vmatprep.subr.bf16.mxu0 %v3751_v21  ;;  %2883 = vmatprep.mubr.bf16.mxu0 %v3823_v51  ;;  %v3802_v57 = vld [vmem:[#allocation6 + $0x6d0] ss:$8 sps:$4 sm:$0xff]   ;;  %v3805_v59 = vld [vmem:[#allocation6 + $0x6e4] ss:$8 sps:$4 sm:$0xff]   ;;  %v3808_v61 = vld [vmem:[#allocation6 + $0x6e0] ss:$8 sps:$4 sm:$0xff]  }
  0x5f   :  { %v3809_v62 = vld [vmem:[#allocation6 + $0xf4] ss:$8 sps:$4 sm:$0xff]   ;;  %v3813_v0 = vld [vmem:[#allocation6 + $0xf0] ss:$8 sps:$4 sm:$0xff]   ;;  %v3820_v2 = vld [vmem:[#allocation6 + $0x104] ss:$8 sps:$4 sm:$0xff]  }
  0x60   :  { %2604 = vmatpush1.bf16.msra.mxu1 %v3753_v22  ;;  %v3811_v63 = vld [vmem:[#allocation6 + $0x6f4] ss:$8 sps:$4 sm:$0xff]   ;;  %v3814_v1 = vld [vmem:[#allocation6 + $0x6f0] ss:$8 sps:$4 sm:$0xff]   ;;  %v3826_v3 = vld [vmem:[#allocation6 + $0x704] ss:$8 sps:$4 sm:$0xff]  }
  0x61   :  { %2862 = vmatpush1.bf16.msra.mxu0 %v3754_v23  ;;  %2605 = vmatprep.subr.bf16.mxu1 %v3755_v24  ;;  %v3815_v4 = vld [vmem:[#allocation3] ss:$100 sps:$4 sm:$0xff]   ;;  %v3818_v5 = vld [vmem:[#allocation6 + $0x100] ss:$8 sps:$4 sm:$0xff]   ;;  %v3835_v12 = vld [vmem:[#allocation6 + $0x124] ss:$8 sps:$4 sm:$0xff]  }
  0x62   :  { %2863 = vmatprep.subr.bf16.mxu0 %v3757_v25  ;;  %v3821_v6 = vld [vmem:[#allocation3 + $0x30] ss:$100 sps:$4 sm:$0xff]   ;;  %v3829_v8 = vld [vmem:[#allocation6 + $0x114] ss:$8 sps:$4 sm:$0xff]   ;;  %v3827_v10 = vld [vmem:[#allocation6 + $0x110] ss:$8 sps:$4 sm:$0xff]  }
  0x63   :  { %v3824_v7 = vld [vmem:[#allocation6 + $0x700] ss:$8 sps:$4 sm:$0xff]   ;;  %v3832_v9 = vld [vmem:[#allocation6 + $0x714] ss:$8 sps:$4 sm:$0xff]   ;;  %v3830_v11 = vld [vmem:[#allocation6 + $0x710] ss:$8 sps:$4 sm:$0xff]  }
  0x64   :  { %2606 = vmatpush1.bf16.msra.mxu1 %v3759_v26  ;;  %v3838_v13 = vld [vmem:[#allocation6 + $0x724] ss:$8 sps:$4 sm:$0xff]   ;;  %v3833_v14 = vld [vmem:[#allocation6 + $0x120] ss:$8 sps:$4 sm:$0xff]   ;;  %v3841_v16 = vld [vmem:[#allocation6 + $0x134] ss:$8 sps:$4 sm:$0xff]  }
  0x65   :  { %2864 = vmatpush1.bf16.msra.mxu0 %v3760_v27  ;;  %2607 = vmatprep.subr.bf16.mxu1 %v3761_v28  ;;  %v3836_v15 = vld [vmem:[#allocation6 + $0x720] ss:$8 sps:$4 sm:$0xff]   ;;  %v3844_v17 = vld [vmem:[#allocation6 + $0x734] ss:$8 sps:$4 sm:$0xff]   ;;  %v3839_v18 = vld [vmem:[#allocation6 + $0x130] ss:$8 sps:$4 sm:$0xff]  }
  0x66   :  { %2865 = vmatprep.subr.bf16.mxu0 %v3763_v29  ;;  %v3842_v19 = vld [vmem:[#allocation6 + $0x730] ss:$8 sps:$4 sm:$0xff]   ;;  %v3847_v20 = vld [vmem:[#allocation6 + $0x144] ss:$8 sps:$4 sm:$0xff]   ;;  %v3845_v22 = vld [vmem:[#allocation6 + $0x140] ss:$8 sps:$4 sm:$0xff]  }
  0x67   :  { %v3850_v21 = vld [vmem:[#allocation6 + $0x744] ss:$8 sps:$4 sm:$0xff]   ;;  %v3848_v23 = vld [vmem:[#allocation6 + $0x740] ss:$8 sps:$4 sm:$0xff]   ;;  %v3853_v24 = vld [vmem:[#allocation6 + $0x154] ss:$8 sps:$4 sm:$0xff]  }
  0x68   :  { %2608 = vmatpush1.bf16.msra.mxu1 %v3765_v30  ;;  %v3856_v25 = vld [vmem:[#allocation6 + $0x754] ss:$8 sps:$4 sm:$0xff]   ;;  %v3851_v26 = vld [vmem:[#allocation6 + $0x150] ss:$8 sps:$4 sm:$0xff]   ;;  %v3859_v28 = vld [vmem:[#allocation6 + $0x164] ss:$8 sps:$4 sm:$0xff]  }
  0x69   :  { %2866 = vmatpush1.bf16.msra.mxu0 %v3766_v31  ;;  %2609 = vmatprep.subr.bf16.mxu1 %v3767_v32  ;;  %v3854_v27 = vld [vmem:[#allocation6 + $0x750] ss:$8 sps:$4 sm:$0xff]   ;;  %v3862_v29 = vld [vmem:[#allocation6 + $0x764] ss:$8 sps:$4 sm:$0xff]   ;;  %v3857_v30 = vld [vmem:[#allocation6 + $0x160] ss:$8 sps:$4 sm:$0xff]  }
  0x6a   :  { %2867 = vmatprep.subr.bf16.mxu0 %v3769_v33  ;;  %v3860_v31 = vld [vmem:[#allocation6 + $0x760] ss:$8 sps:$4 sm:$0xff]   ;;  %v3865_v32 = vld [vmem:[#allocation6 + $0x174] ss:$8 sps:$4 sm:$0xff]   ;;  %vm2589_vm0 = vcmask 523264   ;;  %vm3217_vm3 = vcmask 130112  }
  0x6b   :  { %v3868_v33 = vld [vmem:[#allocation6 + $0x774] ss:$8 sps:$4 sm:$0xff]   ;;  %v3881_v48 = vld [vmem:[#allocation6 + $0x1a0] ss:$8 sps:$4 sm:$0xff]   ;;  %vm3220_vm4 = vcmask 122880  }
  0x6c   :  { %2610 = vmatpush1.bf16.msra.mxu1 %v3771_v34  ;;  %v3919_v34 = vld [vmem:[#allocation3 + $0xc] ss:$100 sps:$4 sm:$0xff]   ;;  %v3892_v51 = vld [vmem:[#allocation6 + $0x7b4] ss:$8 sps:$4 sm:$0xff]  }
  0x6d   :  { %2868 = vmatpush1.bf16.msra.mxu0 %v3772_v35  ;;  %2611 = vmatprep.subr.bf16.mxu1 %v3773_v36  ;;  %v3863_v35 = vld [vmem:[#allocation6 + $0x170] ss:$8 sps:$4 sm:$0xff]  }
  0x6e   :  { %2869 = vmatprep.subr.bf16.mxu0 %v3775_v37  ;;  %v3866_v36 = vld [vmem:[#allocation6 + $0x770] ss:$8 sps:$4 sm:$0xff]  }
  0x6f   :  { %v3925_v37 = vld [vmem:[#allocation3 + $0x3c] ss:$100 sps:$4 sm:$0xff]  }
  0x70   :  { %2612 = vmatpush1.bf16.msra.mxu1 %v3777_v38  ;;  %v3871_v38 = vld [vmem:[#allocation6 + $0x184] ss:$8 sps:$4 sm:$0xff]  }
  0x71   :  { %2870 = vmatpush1.bf16.msra.mxu0 %v3778_v39  ;;  %2613 = vmatprep.subr.bf16.mxu1 %v3779_v40  ;;  %v3874_v39 = vld [vmem:[#allocation6 + $0x784] ss:$8 sps:$4 sm:$0xff]   ;;  %v3869_v40 = vld [vmem:[#allocation6 + $0x180] ss:$8 sps:$4 sm:$0xff]  }
  0x72   :  { %2871 = vmatprep.subr.bf16.mxu0 %v3781_v41  ;;  %v3872_v41 = vld [vmem:[#allocation6 + $0x780] ss:$8 sps:$4 sm:$0xff]  }
  0x74   :  { %2614 = vmatpush1.bf16.msra.mxu1 %v3783_v42  ;;  %v3877_v42 = vld [vmem:[#allocation6 + $0x194] ss:$8 sps:$4 sm:$0xff]  }
  0x75   :  { %2872 = vmatpush1.bf16.msra.mxu0 %v3784_v43  ;;  %2615 = vmatprep.subr.bf16.mxu1 %v3785_v44  ;;  %v3880_v43 = vld [vmem:[#allocation6 + $0x794] ss:$8 sps:$4 sm:$0xff]   ;;  %v3875_v44 = vld [vmem:[#allocation6 + $0x190] ss:$8 sps:$4 sm:$0xff]  }
  0x76   :  { %2873 = vmatprep.subr.bf16.mxu0 %v3787_v45  ;;  %v3878_v45 = vld [vmem:[#allocation6 + $0x790] ss:$8 sps:$4 sm:$0xff]  }
  0x78   :  { %2616 = vmatpush1.bf16.msra.mxu1 %v3789_v46  ;;  %v3883_v46 = vld [vmem:[#allocation6 + $0x1a4] ss:$8 sps:$4 sm:$0xff]  }
  0x79   :  { %2874 = vmatpush1.bf16.msra.mxu0 %v3790_v47  ;;  %2617 = vmatprep.subr.bf16.mxu1 %v3791_v49  ;;  %v3886_v47 = vld [vmem:[#allocation6 + $0x7a4] ss:$8 sps:$4 sm:$0xff]   ;;  %v3884_v49 = vld [vmem:[#allocation6 + $0x7a0] ss:$8 sps:$4 sm:$0xff]  }
  0x7a   :  { %2875 = vmatprep.subr.bf16.mxu0 %v3793_v50  ;;  %v3889_v50 = vld [vmem:[#allocation6 + $0x1b4] ss:$8 sps:$4 sm:$0xff]  }
  0x7c   :  { %2618 = vmatpush1.bf16.msra.mxu1 %v3795_v52  ;;  %v3887_v52 = vld [vmem:[#allocation6 + $0x1b0] ss:$8 sps:$4 sm:$0xff]  }
  0x7d   :  { %2876 = vmatpush1.bf16.msra.mxu0 %v3796_v53  ;;  %2619 = vmatprep.subr.bf16.mxu1 %v3797_v54  ;;  %v3890_v53 = vld [vmem:[#allocation6 + $0x7b0] ss:$8 sps:$4 sm:$0xff]   ;;  %v3895_v54 = vld [vmem:[#allocation6 + $0x1c4] ss:$8 sps:$4 sm:$0xff]  }
  0x7e   :  { %2877 = vmatprep.subr.bf16.mxu0 %v3799_v55  ;;  %v3898_v55 = vld [vmem:[#allocation6 + $0x7c4] ss:$8 sps:$4 sm:$0xff]  }
  0x80   :  { %2620 = vmatpush1.bf16.msra.mxu1 %v3801_v56  ;;  %v3893_v56 = vld [vmem:[#allocation6 + $0x1c0] ss:$8 sps:$4 sm:$0xff]  }
  0x81   :  { %2878 = vmatpush1.bf16.msra.mxu0 %v3802_v57  ;;  %2621 = vmatprep.subr.bf16.mxu1 %v3803_v58  ;;  %v3896_v57 = vld [vmem:[#allocation6 + $0x7c0] ss:$8 sps:$4 sm:$0xff]   ;;  %v3901_v58 = vld [vmem:[#allocation6 + $0x1d4] ss:$8 sps:$4 sm:$0xff]  }
  0x82   :  { %2879 = vmatprep.subr.bf16.mxu0 %v3805_v59  ;;  %v3904_v59 = vld [vmem:[#allocation6 + $0x7d4] ss:$8 sps:$4 sm:$0xff]  }
  0x84   :  { %2622 = vmatpush1.bf16.msra.mxu1 %v3807_v60  ;;  %v3899_v60 = vld [vmem:[#allocation6 + $0x1d0] ss:$8 sps:$4 sm:$0xff]  }
  0x85   :  { %2880 = vmatpush1.bf16.msra.mxu0 %v3808_v61  ;;  %2623 = vmatprep.subr.bf16.mxu1 %v3809_v62  ;;  %v3902_v61 = vld [vmem:[#allocation6 + $0x7d0] ss:$8 sps:$4 sm:$0xff]   ;;  %v3907_v62 = vld [vmem:[#allocation6 + $0x1e4] ss:$8 sps:$4 sm:$0xff]  }
  0x86   :  { %2881 = vmatprep.subr.bf16.mxu0 %v3811_v63  ;;  %v3910_v63 = vld [vmem:[#allocation6 + $0x7e4] ss:$8 sps:$4 sm:$0xff]  }
  0x88   :  { %2624 = vmatpush1.bf16.msra.mxu1 %v3813_v0  ;;  %v3905_v0 = vld [vmem:[#allocation6 + $0x1e0] ss:$8 sps:$4 sm:$0xff]  }
  0x89   :  { %2882 = vmatpush1.bf16.msra.mxu0 %v3814_v1  ;;  %2636 = vmatprep.subr.bf16.mxu1 %v3820_v2  ;;  %v3908_v1 = vld [vmem:[#allocation6 + $0x7e0] ss:$8 sps:$4 sm:$0xff]   ;;  %v3913_v2 = vld [vmem:[#allocation6 + $0x1f4] ss:$8 sps:$4 sm:$0xff]  }
  0x8a   :  { %2894 = vmatprep.subr.bf16.mxu0 %v3826_v3  ;;  %v3916_v3 = vld [vmem:[#allocation6 + $0x7f4] ss:$8 sps:$4 sm:$0xff]  }
  0x8b   :  { %2626 = vmatmul.mubr.bf16.vlgmr.msra.gmra.mrb[0].mxu1 %v3815_v4  ;;  %v3911_v4 = vld [vmem:[#allocation6 + $0x1f0] ss:$8 sps:$4 sm:$0xff]  }
  0x8c   :  { %2884 = vmatmul.mubr.bf16.vlgmr.msra.gmra.mrb[0].mxu0 %v3821_v6  ;;  %2637 = vmatpush1.bf16.msra.mxu1 %v3818_v5  ;;  %v3914_v5 = vld [vmem:[#allocation6 + $0x7f0] ss:$8 sps:$4 sm:$0xff]   ;;  %v3922_v6 = vld [vmem:[#allocation6 + $0x204] ss:$8 sps:$4 sm:$0xff]  }
  0x8d   :  { %2895 = vmatpush1.bf16.msra.mxu0 %v3824_v7  ;;  %2638 = vmatprep.subr.bf16.mxu1 %v3829_v8  ;;  %v3928_v7 = vld [vmem:[#allocation6 + $0x804] ss:$8 sps:$4 sm:$0xff]  }
  0x8e   :  { %2896 = vmatprep.subr.bf16.mxu0 %v3832_v9  ;;  %2668 = vmatprep.mubr.bf16.mxu1 %v3919_v34  ;;  %v3917_v8 = vld [vmem:[#allocation3 + $0x8] ss:$100 sps:$4 sm:$0xff]  }
  0x8f   :  { %2926 = vmatprep.mubr.bf16.mxu0 %v3925_v37  ;;  %v3920_v9 = vld [vmem:[#allocation6 + $0x200] ss:$8 sps:$4 sm:$0xff]   ;;  %v3961_v34 = vld [vmem:[#allocation6 + $0x264] ss:$8 sps:$4 sm:$0xff]  }
  0x90   :  { %2639 = vmatpush1.bf16.msra.mxu1 %v3827_v10  ;;  %v3923_v10 = vld [vmem:[#allocation3 + $0x38] ss:$100 sps:$4 sm:$0xff]   ;;  %v3962_v37 = vld [vmem:[#allocation6 + $0x860] ss:$8 sps:$4 sm:$0xff]  }
  0x91   :  { %2897 = vmatpush1.bf16.msra.mxu0 %v3830_v11  ;;  %2640 = vmatprep.subr.bf16.mxu1 %v3835_v12  ;;  %v3926_v11 = vld [vmem:[#allocation6 + $0x800] ss:$8 sps:$4 sm:$0xff]   ;;  %v3931_v12 = vld [vmem:[#allocation6 + $0x214] ss:$8 sps:$4 sm:$0xff]  }
  0x92   :  { %2898 = vmatprep.subr.bf16.mxu0 %v3838_v13  ;;  %v3934_v13 = vld [vmem:[#allocation6 + $0x814] ss:$8 sps:$4 sm:$0xff]  }
  0x94   :  { %2641 = vmatpush1.bf16.msra.mxu1 %v3833_v14  ;;  %v3929_v14 = vld [vmem:[#allocation6 + $0x210] ss:$8 sps:$4 sm:$0xff]  }
  0x95   :  { %2899 = vmatpush1.bf16.msra.mxu0 %v3836_v15  ;;  %2642 = vmatprep.subr.bf16.mxu1 %v3841_v16  ;;  %v3932_v15 = vld [vmem:[#allocation6 + $0x810] ss:$8 sps:$4 sm:$0xff]   ;;  %v3937_v16 = vld [vmem:[#allocation6 + $0x224] ss:$8 sps:$4 sm:$0xff]  }
  0x96   :  { %2900 = vmatprep.subr.bf16.mxu0 %v3844_v17  ;;  %v3940_v17 = vld [vmem:[#allocation6 + $0x824] ss:$8 sps:$4 sm:$0xff]  }
  0x98   :  { %2643 = vmatpush1.bf16.msra.mxu1 %v3839_v18  ;;  %v3935_v18 = vld [vmem:[#allocation6 + $0x220] ss:$8 sps:$4 sm:$0xff]  }
  0x99   :  { %2901 = vmatpush1.bf16.msra.mxu0 %v3842_v19  ;;  %2644 = vmatprep.subr.bf16.mxu1 %v3847_v20  ;;  %v4021_v19 = vld [vmem:[#allocation3 + $0x14] ss:$100 sps:$4 sm:$0xff]   ;;  %v3938_v20 = vld [vmem:[#allocation6 + $0x820] ss:$8 sps:$4 sm:$0xff]  }
  0x9a   :  { %2902 = vmatprep.subr.bf16.mxu0 %v3850_v21  ;;  %v3943_v21 = vld [vmem:[#allocation6 + $0x234] ss:$8 sps:$4 sm:$0xff]  }
  0x9c   :  { %2645 = vmatpush1.bf16.msra.mxu1 %v3845_v22  ;;  %v3946_v22 = vld [vmem:[#allocation6 + $0x834] ss:$8 sps:$4 sm:$0xff]  }
  0x9d   :  { %2903 = vmatpush1.bf16.msra.mxu0 %v3848_v23  ;;  %2646 = vmatprep.subr.bf16.mxu1 %v3853_v24  ;;  %v4027_v23 = vld [vmem:[#allocation3 + $0x44] ss:$100 sps:$4 sm:$0xff]   ;;  %v3941_v24 = vld [vmem:[#allocation6 + $0x230] ss:$8 sps:$4 sm:$0xff]  }
  0x9e   :  { %2904 = vmatprep.subr.bf16.mxu0 %v3856_v25  ;;  %v3944_v25 = vld [vmem:[#allocation6 + $0x830] ss:$8 sps:$4 sm:$0xff]  }
  0xa0   :  { %2647 = vmatpush1.bf16.msra.mxu1 %v3851_v26  ;;  %v3949_v26 = vld [vmem:[#allocation6 + $0x244] ss:$8 sps:$4 sm:$0xff]  }
  0xa1   :  { %2905 = vmatpush1.bf16.msra.mxu0 %v3854_v27  ;;  %2648 = vmatprep.subr.bf16.mxu1 %v3859_v28  ;;  %v3952_v27 = vld [vmem:[#allocation6 + $0x844] ss:$8 sps:$4 sm:$0xff]   ;;  %v3947_v28 = vld [vmem:[#allocation6 + $0x240] ss:$8 sps:$4 sm:$0xff]  }
  0xa2   :  { %2906 = vmatprep.subr.bf16.mxu0 %v3862_v29  ;;  %v3950_v29 = vld [vmem:[#allocation6 + $0x840] ss:$8 sps:$4 sm:$0xff]  }
  0xa4   :  { %2649 = vmatpush1.bf16.msra.mxu1 %v3857_v30  ;;  %v3955_v30 = vld [vmem:[#allocation6 + $0x254] ss:$8 sps:$4 sm:$0xff]  }
  0xa5   :  { %2907 = vmatpush1.bf16.msra.mxu0 %v3860_v31  ;;  %2650 = vmatprep.subr.bf16.mxu1 %v3865_v32  ;;  %v3958_v31 = vld [vmem:[#allocation6 + $0x854] ss:$8 sps:$4 sm:$0xff]   ;;  %v3953_v32 = vld [vmem:[#allocation6 + $0x250] ss:$8 sps:$4 sm:$0xff]  }
  0xa6   :  { %2908 = vmatprep.subr.bf16.mxu0 %v3868_v33  ;;  %v3956_v33 = vld [vmem:[#allocation6 + $0x850] ss:$8 sps:$4 sm:$0xff]  }
  0xa8   :  { %2651 = vmatpush1.bf16.msra.mxu1 %v3863_v35  ;;  %v3964_v35 = vld [vmem:[#allocation6 + $0x864] ss:$8 sps:$4 sm:$0xff]  }
  0xa9   :  { %2909 = vmatpush1.bf16.msra.mxu0 %v3866_v36  ;;  %2652 = vmatprep.subr.bf16.mxu1 %v3871_v38  ;;  %v3959_v36 = vld [vmem:[#allocation6 + $0x260] ss:$8 sps:$4 sm:$0xff]   ;;  %v3967_v38 = vld [vmem:[#allocation6 + $0x274] ss:$8 sps:$4 sm:$0xff]  }
  0xaa   :  { %2910 = vmatprep.subr.bf16.mxu0 %v3874_v39  ;;  %v3970_v39 = vld [vmem:[#allocation6 + $0x874] ss:$8 sps:$4 sm:$0xff]  }
  0xac   :  { %2653 = vmatpush1.bf16.msra.mxu1 %v3869_v40  ;;  %v3965_v40 = vld [vmem:[#allocation6 + $0x270] ss:$8 sps:$4 sm:$0xff]  }
  0xad   :  { %2911 = vmatpush1.bf16.msra.mxu0 %v3872_v41  ;;  %2654 = vmatprep.subr.bf16.mxu1 %v3877_v42  ;;  %v3968_v41 = vld [vmem:[#allocation6 + $0x870] ss:$8 sps:$4 sm:$0xff]   ;;  %v3973_v42 = vld [vmem:[#allocation6 + $0x284] ss:$8 sps:$4 sm:$0xff]  }
  0xae   :  { %2912 = vmatprep.subr.bf16.mxu0 %v3880_v43  ;;  %v3976_v43 = vld [vmem:[#allocation6 + $0x884] ss:$8 sps:$4 sm:$0xff]  }
  0xb0   :  { %2655 = vmatpush1.bf16.msra.mxu1 %v3875_v44  ;;  %v3971_v44 = vld [vmem:[#allocation6 + $0x280] ss:$8 sps:$4 sm:$0xff]  }
  0xb1   :  { %2913 = vmatpush1.bf16.msra.mxu0 %v3878_v45  ;;  %2656 = vmatprep.subr.bf16.mxu1 %v3883_v46  ;;  %v3974_v45 = vld [vmem:[#allocation6 + $0x880] ss:$8 sps:$4 sm:$0xff]   ;;  %v3979_v46 = vld [vmem:[#allocation6 + $0x294] ss:$8 sps:$4 sm:$0xff]  }
  0xb2   :  { %2914 = vmatprep.subr.bf16.mxu0 %v3886_v47  ;;  %v3982_v47 = vld [vmem:[#allocation6 + $0x894] ss:$8 sps:$4 sm:$0xff]  }
  0xb4   :  { %2657 = vmatpush1.bf16.msra.mxu1 %v3881_v48  ;;  %v3977_v48 = vld [vmem:[#allocation6 + $0x290] ss:$8 sps:$4 sm:$0xff]  }
  0xb5   :  { %2915 = vmatpush1.bf16.msra.mxu0 %v3884_v49  ;;  %2658 = vmatprep.subr.bf16.mxu1 %v3889_v50  ;;  %v3980_v49 = vld [vmem:[#allocation6 + $0x890] ss:$8 sps:$4 sm:$0xff]   ;;  %v3985_v50 = vld [vmem:[#allocation6 + $0x2a4] ss:$8 sps:$4 sm:$0xff]  }
  0xb6   :  { %2916 = vmatprep.subr.bf16.mxu0 %v3892_v51  ;;  %v3988_v51 = vld [vmem:[#allocation6 + $0x8a4] ss:$8 sps:$4 sm:$0xff]  }
  0xb8   :  { %2659 = vmatpush1.bf16.msra.mxu1 %v3887_v52  ;;  %v3983_v52 = vld [vmem:[#allocation6 + $0x2a0] ss:$8 sps:$4 sm:$0xff]  }
  0xb9   :  { %2917 = vmatpush1.bf16.msra.mxu0 %v3890_v53  ;;  %2660 = vmatprep.subr.bf16.mxu1 %v3895_v54  ;;  %v3986_v53 = vld [vmem:[#allocation6 + $0x8a0] ss:$8 sps:$4 sm:$0xff]   ;;  %v3991_v54 = vld [vmem:[#allocation6 + $0x2b4] ss:$8 sps:$4 sm:$0xff]  }
  0xba   :  { %2918 = vmatprep.subr.bf16.mxu0 %v3898_v55  ;;  %v3994_v55 = vld [vmem:[#allocation6 + $0x8b4] ss:$8 sps:$4 sm:$0xff]  }
  0xbc   :  { %2661 = vmatpush1.bf16.msra.mxu1 %v3893_v56  ;;  %v3989_v56 = vld [vmem:[#allocation6 + $0x2b0] ss:$8 sps:$4 sm:$0xff]  }
  0xbd   :  { %2919 = vmatpush1.bf16.msra.mxu0 %v3896_v57  ;;  %2662 = vmatprep.subr.bf16.mxu1 %v3901_v58  ;;  %v3992_v57 = vld [vmem:[#allocation6 + $0x8b0] ss:$8 sps:$4 sm:$0xff]   ;;  %v3997_v58 = vld [vmem:[#allocation6 + $0x2c4] ss:$8 sps:$4 sm:$0xff]  }
  0xbe   :  { %2920 = vmatprep.subr.bf16.mxu0 %v3904_v59  ;;  %v4000_v59 = vld [vmem:[#allocation6 + $0x8c4] ss:$8 sps:$4 sm:$0xff]  }
  0xc0   :  { %2663 = vmatpush1.bf16.msra.mxu1 %v3899_v60  ;;  %v3995_v60 = vld [vmem:[#allocation6 + $0x2c0] ss:$8 sps:$4 sm:$0xff]  }
  0xc1   :  { %2921 = vmatpush1.bf16.msra.mxu0 %v3902_v61  ;;  %2664 = vmatprep.subr.bf16.mxu1 %v3907_v62  ;;  %v3998_v61 = vld [vmem:[#allocation6 + $0x8c0] ss:$8 sps:$4 sm:$0xff]   ;;  %v4003_v62 = vld [vmem:[#allocation6 + $0x2d4] ss:$8 sps:$4 sm:$0xff]  }
  0xc2   :  { %2922 = vmatprep.subr.bf16.mxu0 %v3910_v63  ;;  %v4006_v63 = vld [vmem:[#allocation6 + $0x8d4] ss:$8 sps:$4 sm:$0xff]  }
  0xc4   :  { %2665 = vmatpush1.bf16.msra.mxu1 %v3905_v0  ;;  %v4001_v0 = vld [vmem:[#allocation6 + $0x2d0] ss:$8 sps:$4 sm:$0xff]  }
  0xc5   :  { %2923 = vmatpush1.bf16.msra.mxu0 %v3908_v1  ;;  %2666 = vmatprep.subr.bf16.mxu1 %v3913_v2  ;;  %v4004_v1 = vld [vmem:[#allocation6 + $0x8d0] ss:$8 sps:$4 sm:$0xff]   ;;  %v4009_v2 = vld [vmem:[#allocation6 + $0x2e4] ss:$8 sps:$4 sm:$0xff]  }
  0xc6   :  { %2924 = vmatprep.subr.bf16.mxu0 %v3916_v3  ;;  %v4012_v3 = vld [vmem:[#allocation6 + $0x8e4] ss:$8 sps:$4 sm:$0xff]  }
  0xc8   :  { %2667 = vmatpush1.bf16.msra.mxu1 %v3911_v4  ;;  %v4007_v4 = vld [vmem:[#allocation6 + $0x2e0] ss:$8 sps:$4 sm:$0xff]  }
  0xc9   :  { %2925 = vmatpush1.bf16.msra.mxu0 %v3914_v5  ;;  %2679 = vmatprep.subr.bf16.mxu1 %v3922_v6  ;;  %v4010_v5 = vld [vmem:[#allocation6 + $0x8e0] ss:$8 sps:$4 sm:$0xff]   ;;  %v4015_v6 = vld [vmem:[#allocation6 + $0x2f4] ss:$8 sps:$4 sm:$0xff]  }
  0xca   :  { %2937 = vmatprep.subr.bf16.mxu0 %v3928_v7  ;;  %v4018_v7 = vld [vmem:[#allocation6 + $0x8f4] ss:$8 sps:$4 sm:$0xff]  }
  0xcb   :  { %2669 = vmatmul.mubr.bf16.vlgmr.msra.gmra.mrb[0].mxu1 %v3917_v8  ;;  %v4013_v8 = vld [vmem:[#allocation6 + $0x2f0] ss:$8 sps:$4 sm:$0xff]  }
  0xcc   :  { %2927 = vmatmul.mubr.bf16.vlgmr.msra.gmra.mrb[0].mxu0 %v3923_v10  ;;  %2680 = vmatpush1.bf16.msra.mxu1 %v3920_v9  ;;  %v4016_v9 = vld [vmem:[#allocation6 + $0x8f0] ss:$8 sps:$4 sm:$0xff]   ;;  %v4024_v10 = vld [vmem:[#allocation6 + $0x304] ss:$8 sps:$4 sm:$0xff]  }
  0xcd   :  { %2938 = vmatpush1.bf16.msra.mxu0 %v3926_v11  ;;  %2681 = vmatprep.subr.bf16.mxu1 %v3931_v12  ;;  %v4030_v11 = vld [vmem:[#allocation6 + $0x904] ss:$8 sps:$4 sm:$0xff]  }
  0xce   :  { %2939 = vmatprep.subr.bf16.mxu0 %v3934_v13  ;;  %2711 = vmatprep.mubr.bf16.mxu1 %v4021_v19  ;;  %v4019_v12 = vld [vmem:[#allocation3 + $0x10] ss:$100 sps:$4 sm:$0xff]  }
  0xcf   :  { %2969 = vmatprep.mubr.bf16.mxu0 %v4027_v23  ;;  %v4022_v13 = vld [vmem:[#allocation6 + $0x300] ss:$8 sps:$4 sm:$0xff]   ;;  %v4042_v23 = vld [vmem:[#allocation6 + $0x924] ss:$8 sps:$4 sm:$0xff]  }
  0xd0   :  { %2682 = vmatpush1.bf16.msra.mxu1 %v3929_v14  ;;  %v4025_v14 = vld [vmem:[#allocation3 + $0x40] ss:$100 sps:$4 sm:$0xff]   ;;  %v4129_v19 = vld [vmem:[#allocation3 + $0x4c] ss:$100 sps:$4 sm:$0xff]  }
  0xd1   :  { %2940 = vmatpush1.bf16.msra.mxu0 %v3932_v15  ;;  %2683 = vmatprep.subr.bf16.mxu1 %v3937_v16  ;;  %v4028_v15 = vld [vmem:[#allocation6 + $0x900] ss:$8 sps:$4 sm:$0xff]   ;;  %v4033_v16 = vld [vmem:[#allocation6 + $0x314] ss:$8 sps:$4 sm:$0xff]  }
  0xd2   :  { %2941 = vmatprep.subr.bf16.mxu0 %v3940_v17  ;;  %v4036_v17 = vld [vmem:[#allocation6 + $0x914] ss:$8 sps:$4 sm:$0xff]  }
  0xd4   :  { %2684 = vmatpush1.bf16.msra.mxu1 %v3935_v18  ;;  %v4123_v18 = vld [vmem:[#allocation3 + $0x1c] ss:$100 sps:$4 sm:$0xff]  }
  0xd5   :  { %2942 = vmatpush1.bf16.msra.mxu0 %v3938_v20  ;;  %2685 = vmatprep.subr.bf16.mxu1 %v3943_v21  ;;  %v4031_v20 = vld [vmem:[#allocation6 + $0x310] ss:$8 sps:$4 sm:$0xff]  }
  0xd6   :  { %2943 = vmatprep.subr.bf16.mxu0 %v3946_v22  ;;  %v4034_v21 = vld [vmem:[#allocation6 + $0x910] ss:$8 sps:$4 sm:$0xff]   ;;  %v4039_v22 = vld [vmem:[#allocation6 + $0x324] ss:$8 sps:$4 sm:$0xff]  }
  0xd8   :  { %2686 = vmatpush1.bf16.msra.mxu1 %v3941_v24  ;;  %v4037_v24 = vld [vmem:[#allocation6 + $0x320] ss:$8 sps:$4 sm:$0xff]  }
  0xd9   :  { %2944 = vmatpush1.bf16.msra.mxu0 %v3944_v25  ;;  %2687 = vmatprep.subr.bf16.mxu1 %v3949_v26  ;;  %v4040_v25 = vld [vmem:[#allocation6 + $0x920] ss:$8 sps:$4 sm:$0xff]   ;;  %v4045_v26 = vld [vmem:[#allocation6 + $0x334] ss:$8 sps:$4 sm:$0xff]  }
  0xda   :  { %2945 = vmatprep.subr.bf16.mxu0 %v3952_v27  ;;  %v4048_v27 = vld [vmem:[#allocation6 + $0x934] ss:$8 sps:$4 sm:$0xff]  }
  0xdc   :  { %2688 = vmatpush1.bf16.msra.mxu1 %v3947_v28  ;;  %v4043_v28 = vld [vmem:[#allocation6 + $0x330] ss:$8 sps:$4 sm:$0xff]  }
  0xdd   :  { %2946 = vmatpush1.bf16.msra.mxu0 %v3950_v29  ;;  %2689 = vmatprep.subr.bf16.mxu1 %v3955_v30  ;;  %v4046_v29 = vld [vmem:[#allocation6 + $0x930] ss:$8 sps:$4 sm:$0xff]   ;;  %v4051_v30 = vld [vmem:[#allocation6 + $0x344] ss:$8 sps:$4 sm:$0xff]  }
  0xde   :  { %2947 = vmatprep.subr.bf16.mxu0 %v3958_v31  ;;  %v4054_v31 = vld [vmem:[#allocation6 + $0x944] ss:$8 sps:$4 sm:$0xff]  }
  0xe0   :  { %2690 = vmatpush1.bf16.msra.mxu1 %v3953_v32  ;;  %v4049_v32 = vld [vmem:[#allocation6 + $0x340] ss:$8 sps:$4 sm:$0xff]  }
  0xe1   :  { %2948 = vmatpush1.bf16.msra.mxu0 %v3956_v33  ;;  %2691 = vmatprep.subr.bf16.mxu1 %v3961_v34  ;;  %v4052_v33 = vld [vmem:[#allocation6 + $0x940] ss:$8 sps:$4 sm:$0xff]   ;;  %v4057_v34 = vld [vmem:[#allocation6 + $0x354] ss:$8 sps:$4 sm:$0xff]  }
  0xe2   :  { %2949 = vmatprep.subr.bf16.mxu0 %v3964_v35  ;;  %v4060_v35 = vld [vmem:[#allocation6 + $0x954] ss:$8 sps:$4 sm:$0xff]  }
  0xe4   :  { %2692 = vmatpush1.bf16.msra.mxu1 %v3959_v36  ;;  %v4055_v36 = vld [vmem:[#allocation6 + $0x350] ss:$8 sps:$4 sm:$0xff]  }
  0xe5   :  { %2950 = vmatpush1.bf16.msra.mxu0 %v3962_v37  ;;  %2693 = vmatprep.subr.bf16.mxu1 %v3967_v38  ;;  %v4058_v37 = vld [vmem:[#allocation6 + $0x950] ss:$8 sps:$4 sm:$0xff]   ;;  %v4063_v38 = vld [vmem:[#allocation6 + $0x364] ss:$8 sps:$4 sm:$0xff]  }
  0xe6   :  { %2951 = vmatprep.subr.bf16.mxu0 %v3970_v39  ;;  %v4066_v39 = vld [vmem:[#allocation6 + $0x964] ss:$8 sps:$4 sm:$0xff]  }
  0xe8   :  { %2694 = vmatpush1.bf16.msra.mxu1 %v3965_v40  ;;  %v4061_v40 = vld [vmem:[#allocation6 + $0x360] ss:$8 sps:$4 sm:$0xff]  }
  0xe9   :  { %2952 = vmatpush1.bf16.msra.mxu0 %v3968_v41  ;;  %2695 = vmatprep.subr.bf16.mxu1 %v3973_v42  ;;  %v4064_v41 = vld [vmem:[#allocation6 + $0x960] ss:$8 sps:$4 sm:$0xff]   ;;  %v4069_v42 = vld [vmem:[#allocation6 + $0x374] ss:$8 sps:$4 sm:$0xff]  }
  0xea   :  { %2953 = vmatprep.subr.bf16.mxu0 %v3976_v43  ;;  %v4072_v43 = vld [vmem:[#allocation6 + $0x974] ss:$8 sps:$4 sm:$0xff]  }
  0xec   :  { %2696 = vmatpush1.bf16.msra.mxu1 %v3971_v44  ;;  %v4067_v44 = vld [vmem:[#allocation6 + $0x370] ss:$8 sps:$4 sm:$0xff]  }
  0xed   :  { %2954 = vmatpush1.bf16.msra.mxu0 %v3974_v45  ;;  %2697 = vmatprep.subr.bf16.mxu1 %v3979_v46  ;;  %v4070_v45 = vld [vmem:[#allocation6 + $0x970] ss:$8 sps:$4 sm:$0xff]   ;;  %v4075_v46 = vld [vmem:[#allocation6 + $0x384] ss:$8 sps:$4 sm:$0xff]  }
  0xee   :  { %2955 = vmatprep.subr.bf16.mxu0 %v3982_v47  ;;  %v4078_v47 = vld [vmem:[#allocation6 + $0x984] ss:$8 sps:$4 sm:$0xff]  }
  0xf0   :  { %2698 = vmatpush1.bf16.msra.mxu1 %v3977_v48  ;;  %v4073_v48 = vld [vmem:[#allocation6 + $0x380] ss:$8 sps:$4 sm:$0xff]  }
  0xf1   :  { %2956 = vmatpush1.bf16.msra.mxu0 %v3980_v49  ;;  %2699 = vmatprep.subr.bf16.mxu1 %v3985_v50  ;;  %v4076_v49 = vld [vmem:[#allocation6 + $0x980] ss:$8 sps:$4 sm:$0xff]   ;;  %v4081_v50 = vld [vmem:[#allocation6 + $0x394] ss:$8 sps:$4 sm:$0xff]  }
  0xf2   :  { %2957 = vmatprep.subr.bf16.mxu0 %v3988_v51  ;;  %v4084_v51 = vld [vmem:[#allocation6 + $0x994] ss:$8 sps:$4 sm:$0xff]  }
  0xf4   :  { %2700 = vmatpush1.bf16.msra.mxu1 %v3983_v52  ;;  %v4079_v52 = vld [vmem:[#allocation6 + $0x390] ss:$8 sps:$4 sm:$0xff]  }
  0xf5   :  { %2958 = vmatpush1.bf16.msra.mxu0 %v3986_v53  ;;  %2701 = vmatprep.subr.bf16.mxu1 %v3991_v54  ;;  %v4082_v53 = vld [vmem:[#allocation6 + $0x990] ss:$8 sps:$4 sm:$0xff]   ;;  %v4087_v54 = vld [vmem:[#allocation6 + $0x3a4] ss:$8 sps:$4 sm:$0xff]  }
  0xf6   :  { %2959 = vmatprep.subr.bf16.mxu0 %v3994_v55  ;;  %v4090_v55 = vld [vmem:[#allocation6 + $0x9a4] ss:$8 sps:$4 sm:$0xff]  }
  0xf8   :  { %2702 = vmatpush1.bf16.msra.mxu1 %v3989_v56  ;;  %v4085_v56 = vld [vmem:[#allocation6 + $0x3a0] ss:$8 sps:$4 sm:$0xff]  }
  0xf9   :  { %2960 = vmatpush1.bf16.msra.mxu0 %v3992_v57  ;;  %2703 = vmatprep.subr.bf16.mxu1 %v3997_v58  ;;  %v4088_v57 = vld [vmem:[#allocation6 + $0x9a0] ss:$8 sps:$4 sm:$0xff]   ;;  %v4093_v58 = vld [vmem:[#allocation6 + $0x3b4] ss:$8 sps:$4 sm:$0xff]  }
  0xfa   :  { %2961 = vmatprep.subr.bf16.mxu0 %v4000_v59  ;;  %v4096_v59 = vld [vmem:[#allocation6 + $0x9b4] ss:$8 sps:$4 sm:$0xff]  }
  0xfc   :  { %2704 = vmatpush1.bf16.msra.mxu1 %v3995_v60  ;;  %v4091_v60 = vld [vmem:[#allocation6 + $0x3b0] ss:$8 sps:$4 sm:$0xff]  }
  0xfd   :  { %2962 = vmatpush1.bf16.msra.mxu0 %v3998_v61  ;;  %2705 = vmatprep.subr.bf16.mxu1 %v4003_v62  ;;  %v4094_v61 = vld [vmem:[#allocation6 + $0x9b0] ss:$8 sps:$4 sm:$0xff]   ;;  %v4099_v62 = vld [vmem:[#allocation6 + $0x3c4] ss:$8 sps:$4 sm:$0xff]  }
  0xfe   :  { %2963 = vmatprep.subr.bf16.mxu0 %v4006_v63  ;;  %v4102_v63 = vld [vmem:[#allocation6 + $0x9c4] ss:$8 sps:$4 sm:$0xff]  }
 0x100   :  { %2706 = vmatpush1.bf16.msra.mxu1 %v4001_v0  ;;  %v4097_v0 = vld [vmem:[#allocation6 + $0x3c0] ss:$8 sps:$4 sm:$0xff]  }
 0x101   :  { %2964 = vmatpush1.bf16.msra.mxu0 %v4004_v1  ;;  %2707 = vmatprep.subr.bf16.mxu1 %v4009_v2  ;;  %v4100_v1 = vld [vmem:[#allocation6 + $0x9c0] ss:$8 sps:$4 sm:$0xff]   ;;  %v4105_v2 = vld [vmem:[#allocation6 + $0x3d4] ss:$8 sps:$4 sm:$0xff]  }
 0x102   :  { %2965 = vmatprep.subr.bf16.mxu0 %v4012_v3  ;;  %v4108_v3 = vld [vmem:[#allocation6 + $0x9d4] ss:$8 sps:$4 sm:$0xff]  }
 0x104   :  { %2708 = vmatpush1.bf16.msra.mxu1 %v4007_v4  ;;  %v4103_v4 = vld [vmem:[#allocation6 + $0x3d0] ss:$8 sps:$4 sm:$0xff]  }
 0x105   :  { %2966 = vmatpush1.bf16.msra.mxu0 %v4010_v5  ;;  %2709 = vmatprep.subr.bf16.mxu1 %v4015_v6  ;;  %v4106_v5 = vld [vmem:[#allocation6 + $0x9d0] ss:$8 sps:$4 sm:$0xff]   ;;  %v4111_v6 = vld [vmem:[#allocation6 + $0x3e4] ss:$8 sps:$4 sm:$0xff]  }
 0x106   :  { %2967 = vmatprep.subr.bf16.mxu0 %v4018_v7  ;;  %v4114_v7 = vld [vmem:[#allocation6 + $0x9e4] ss:$8 sps:$4 sm:$0xff]  }
 0x108   :  { %2710 = vmatpush1.bf16.msra.mxu1 %v4013_v8  ;;  %v4109_v8 = vld [vmem:[#allocation6 + $0x3e0] ss:$8 sps:$4 sm:$0xff]  }
 0x109   :  { %2968 = vmatpush1.bf16.msra.mxu0 %v4016_v9  ;;  %2722 = vmatprep.subr.bf16.mxu1 %v4024_v10  ;;  %v4112_v9 = vld [vmem:[#allocation6 + $0x9e0] ss:$8 sps:$4 sm:$0xff]   ;;  %v4117_v10 = vld [vmem:[#allocation6 + $0x3f4] ss:$8 sps:$4 sm:$0xff]  }
 0x10a   :  { %2980 = vmatprep.subr.bf16.mxu0 %v4030_v11  ;;  %v4120_v11 = vld [vmem:[#allocation6 + $0x9f4] ss:$8 sps:$4 sm:$0xff]  }
 0x10b   :  { %2712 = vmatmul.mubr.bf16.vlgmr.msra.gmra.mrb[0].mxu1 %v4019_v12  ;;  %v4115_v12 = vld [vmem:[#allocation6 + $0x3f0] ss:$8 sps:$4 sm:$0xff]  }
 0x10c   :  { %2970 = vmatmul.mubr.bf16.vlgmr.msra.gmra.mrb[0].mxu0 %v4025_v14  ;;  %2723 = vmatpush1.bf16.msra.mxu1 %v4022_v13  ;;  %v4118_v13 = vld [vmem:[#allocation6 + $0x9f0] ss:$8 sps:$4 sm:$0xff]   ;;  %v4126_v14 = vld [vmem:[#allocation6 + $0x404] ss:$8 sps:$4 sm:$0xff]  }
 0x10d   :  { %2981 = vmatpush1.bf16.msra.mxu0 %v4028_v15  ;;  %2724 = vmatprep.subr.bf16.mxu1 %v4033_v16  ;;  %v4132_v15 = vld [vmem:[#allocation6 + $0xa04] ss:$8 sps:$4 sm:$0xff]   ;;  %v4121_v16 = vld [vmem:[#allocation3 + $0x18] ss:$100 sps:$4 sm:$0xff]  }
 0x10e   :  { %2982 = vmatprep.subr.bf16.mxu0 %v4036_v17  ;;  %2754 = vmatprep.mubr.bf16.mxu1 %v4123_v18  ;;  %v4124_v17 = vld [vmem:[#allocation6 + $0x400] ss:$8 sps:$4 sm:$0xff]  }
 0x10f   :  { %3012 = vmatprep.mubr.bf16.mxu0 %v4129_v19  ;;  %v4127_v18 = vld [vmem:[#allocation3 + $0x48] ss:$100 sps:$4 sm:$0xff]  }
 0x110   :  { %2725 = vmatpush1.bf16.msra.mxu1 %v4031_v20  ;;  %v4130_v19 = vld [vmem:[#allocation6 + $0xa00] ss:$8 sps:$4 sm:$0xff]   ;;  %v4135_v20 = vld [vmem:[#allocation6 + $0x414] ss:$8 sps:$4 sm:$0xff]  }
 0x111   :  { %2983 = vmatpush1.bf16.msra.mxu0 %v4034_v21  ;;  %2726 = vmatprep.subr.bf16.mxu1 %v4039_v22  ;;  %v4138_v21 = vld [vmem:[#allocation6 + $0xa14] ss:$8 sps:$4 sm:$0xff]  }
 0x112   :  { %2984 = vmatprep.subr.bf16.mxu0 %v4042_v23  ;;  %v4225_v22 = vld [vmem:[#allocation3 + $0x24] ss:$100 sps:$4 sm:$0xff]   ;;  %v4231_v23 = vld [vmem:[#allocation3 + $0x54] ss:$100 sps:$4 sm:$0xff]  }
 0x114   :  { %2727 = vmatpush1.bf16.msra.mxu1 %v4037_v24  ;;  %v4133_v24 = vld [vmem:[#allocation6 + $0x410] ss:$8 sps:$4 sm:$0xff]  }
 0x115   :  { %2985 = vmatpush1.bf16.msra.mxu0 %v4040_v25  ;;  %2728 = vmatprep.subr.bf16.mxu1 %v4045_v26  ;;  %v4136_v25 = vld [vmem:[#allocation6 + $0xa10] ss:$8 sps:$4 sm:$0xff]   ;;  %v4141_v26 = vld [vmem:[#allocation6 + $0x424] ss:$8 sps:$4 sm:$0xff]  }
 0x116   :  { %2986 = vmatprep.subr.bf16.mxu0 %v4048_v27  ;;  %v4144_v27 = vld [vmem:[#allocation6 + $0xa24] ss:$8 sps:$4 sm:$0xff]  }
 0x118   :  { %2729 = vmatpush1.bf16.msra.mxu1 %v4043_v28  ;;  %v4139_v28 = vld [vmem:[#allocation6 + $0x420] ss:$8 sps:$4 sm:$0xff]  }
 0x119   :  { %2987 = vmatpush1.bf16.msra.mxu0 %v4046_v29  ;;  %2730 = vmatprep.subr.bf16.mxu1 %v4051_v30  ;;  %v4142_v29 = vld [vmem:[#allocation6 + $0xa20] ss:$8 sps:$4 sm:$0xff]   ;;  %v4147_v30 = vld [vmem:[#allocation6 + $0x434] ss:$8 sps:$4 sm:$0xff]  }
 0x11a   :  { %2988 = vmatprep.subr.bf16.mxu0 %v4054_v31  ;;  %v4150_v31 = vld [vmem:[#allocation6 + $0xa34] ss:$8 sps:$4 sm:$0xff]  }
 0x11c   :  { %2731 = vmatpush1.bf16.msra.mxu1 %v4049_v32  ;;  %v4145_v32 = vld [vmem:[#allocation6 + $0x430] ss:$8 sps:$4 sm:$0xff]  }
 0x11d   :  { %2989 = vmatpush1.bf16.msra.mxu0 %v4052_v33  ;;  %2732 = vmatprep.subr.bf16.mxu1 %v4057_v34  ;;  %v4148_v33 = vld [vmem:[#allocation6 + $0xa30] ss:$8 sps:$4 sm:$0xff]   ;;  %v4153_v34 = vld [vmem:[#allocation6 + $0x444] ss:$8 sps:$4 sm:$0xff]  }
 0x11e   :  { %2990 = vmatprep.subr.bf16.mxu0 %v4060_v35  ;;  %v4156_v35 = vld [vmem:[#allocation6 + $0xa44] ss:$8 sps:$4 sm:$0xff]  }
 0x120   :  { %2733 = vmatpush1.bf16.msra.mxu1 %v4055_v36  ;;  %v4151_v36 = vld [vmem:[#allocation6 + $0x440] ss:$8 sps:$4 sm:$0xff]  }
 0x121   :  { %2991 = vmatpush1.bf16.msra.mxu0 %v4058_v37  ;;  %2734 = vmatprep.subr.bf16.mxu1 %v4063_v38  ;;  %v4154_v37 = vld [vmem:[#allocation6 + $0xa40] ss:$8 sps:$4 sm:$0xff]   ;;  %v4159_v38 = vld [vmem:[#allocation6 + $0x454] ss:$8 sps:$4 sm:$0xff]  }
 0x122   :  { %2992 = vmatprep.subr.bf16.mxu0 %v4066_v39  ;;  %v4162_v39 = vld [vmem:[#allocation6 + $0xa54] ss:$8 sps:$4 sm:$0xff]  }
 0x124   :  { %2735 = vmatpush1.bf16.msra.mxu1 %v4061_v40  ;;  %v4157_v40 = vld [vmem:[#allocation6 + $0x450] ss:$8 sps:$4 sm:$0xff]  }
 0x125   :  { %2993 = vmatpush1.bf16.msra.mxu0 %v4064_v41  ;;  %2736 = vmatprep.subr.bf16.mxu1 %v4069_v42  ;;  %v4160_v41 = vld [vmem:[#allocation6 + $0xa50] ss:$8 sps:$4 sm:$0xff]   ;;  %v4165_v42 = vld [vmem:[#allocation6 + $0x464] ss:$8 sps:$4 sm:$0xff]  }
 0x126   :  { %2994 = vmatprep.subr.bf16.mxu0 %v4072_v43  ;;  %v4168_v43 = vld [vmem:[#allocation6 + $0xa64] ss:$8 sps:$4 sm:$0xff]  }
 0x128   :  { %2737 = vmatpush1.bf16.msra.mxu1 %v4067_v44  ;;  %v4163_v44 = vld [vmem:[#allocation6 + $0x460] ss:$8 sps:$4 sm:$0xff]  }
 0x129   :  { %2995 = vmatpush1.bf16.msra.mxu0 %v4070_v45  ;;  %2738 = vmatprep.subr.bf16.mxu1 %v4075_v46  ;;  %v4166_v45 = vld [vmem:[#allocation6 + $0xa60] ss:$8 sps:$4 sm:$0xff]   ;;  %v4171_v46 = vld [vmem:[#allocation6 + $0x474] ss:$8 sps:$4 sm:$0xff]  }
 0x12a   :  { %2996 = vmatprep.subr.bf16.mxu0 %v4078_v47  ;;  %v4174_v47 = vld [vmem:[#allocation6 + $0xa74] ss:$8 sps:$4 sm:$0xff]  }
 0x12c   :  { %2739 = vmatpush1.bf16.msra.mxu1 %v4073_v48  ;;  %v4169_v48 = vld [vmem:[#allocation6 + $0x470] ss:$8 sps:$4 sm:$0xff]  }
 0x12d   :  { %2997 = vmatpush1.bf16.msra.mxu0 %v4076_v49  ;;  %2740 = vmatprep.subr.bf16.mxu1 %v4081_v50  ;;  %v4172_v49 = vld [vmem:[#allocation6 + $0xa70] ss:$8 sps:$4 sm:$0xff]   ;;  %v4177_v50 = vld [vmem:[#allocation6 + $0x484] ss:$8 sps:$4 sm:$0xff]  }
 0x12e   :  { %2998 = vmatprep.subr.bf16.mxu0 %v4084_v51  ;;  %v4180_v51 = vld [vmem:[#allocation6 + $0xa84] ss:$8 sps:$4 sm:$0xff]  }
 0x130   :  { %2741 = vmatpush1.bf16.msra.mxu1 %v4079_v52  ;;  %v4175_v52 = vld [vmem:[#allocation6 + $0x480] ss:$8 sps:$4 sm:$0xff]  }
 0x131   :  { %2999 = vmatpush1.bf16.msra.mxu0 %v4082_v53  ;;  %2742 = vmatprep.subr.bf16.mxu1 %v4087_v54  ;;  %v4178_v53 = vld [vmem:[#allocation6 + $0xa80] ss:$8 sps:$4 sm:$0xff]   ;;  %v4183_v54 = vld [vmem:[#allocation6 + $0x494] ss:$8 sps:$4 sm:$0xff]  }
 0x132   :  { %3000 = vmatprep.subr.bf16.mxu0 %v4090_v55  ;;  %v4186_v55 = vld [vmem:[#allocation6 + $0xa94] ss:$8 sps:$4 sm:$0xff]  }
 0x134   :  { %2743 = vmatpush1.bf16.msra.mxu1 %v4085_v56  ;;  %v4181_v56 = vld [vmem:[#allocation6 + $0x490] ss:$8 sps:$4 sm:$0xff]  }
 0x135   :  { %3001 = vmatpush1.bf16.msra.mxu0 %v4088_v57  ;;  %2744 = vmatprep.subr.bf16.mxu1 %v4093_v58  ;;  %v4184_v57 = vld [vmem:[#allocation6 + $0xa90] ss:$8 sps:$4 sm:$0xff]   ;;  %v4189_v58 = vld [vmem:[#allocation6 + $0x4a4] ss:$8 sps:$4 sm:$0xff]  }
 0x136   :  { %3002 = vmatprep.subr.bf16.mxu0 %v4096_v59  ;;  %v4192_v59 = vld [vmem:[#allocation6 + $0xaa4] ss:$8 sps:$4 sm:$0xff]  }
 0x138   :  { %2745 = vmatpush1.bf16.msra.mxu1 %v4091_v60  ;;  %v4187_v60 = vld [vmem:[#allocation6 + $0x4a0] ss:$8 sps:$4 sm:$0xff]  }
 0x139   :  { %3003 = vmatpush1.bf16.msra.mxu0 %v4094_v61  ;;  %2746 = vmatprep.subr.bf16.mxu1 %v4099_v62  ;;  %v4190_v61 = vld [vmem:[#allocation6 + $0xaa0] ss:$8 sps:$4 sm:$0xff]   ;;  %v4195_v62 = vld [vmem:[#allocation6 + $0x4b4] ss:$8 sps:$4 sm:$0xff]  }
 0x13a   :  { %3004 = vmatprep.subr.bf16.mxu0 %v4102_v63  ;;  %v4198_v63 = vld [vmem:[#allocation6 + $0xab4] ss:$8 sps:$4 sm:$0xff]  }
 0x13c   :  { %2747 = vmatpush1.bf16.msra.mxu1 %v4097_v0  ;;  %v4193_v0 = vld [vmem:[#allocation6 + $0x4b0] ss:$8 sps:$4 sm:$0xff]  }
 0x13d   :  { %3005 = vmatpush1.bf16.msra.mxu0 %v4100_v1  ;;  %2748 = vmatprep.subr.bf16.mxu1 %v4105_v2  ;;  %v4196_v1 = vld [vmem:[#allocation6 + $0xab0] ss:$8 sps:$4 sm:$0xff]   ;;  %v4201_v2 = vld [vmem:[#allocation6 + $0x4c4] ss:$8 sps:$4 sm:$0xff]  }
 0x13e   :  { %3006 = vmatprep.subr.bf16.mxu0 %v4108_v3  ;;  %v4204_v3 = vld [vmem:[#allocation6 + $0xac4] ss:$8 sps:$4 sm:$0xff]  }
 0x140   :  { %2749 = vmatpush1.bf16.msra.mxu1 %v4103_v4  ;;  %v4199_v4 = vld [vmem:[#allocation6 + $0x4c0] ss:$8 sps:$4 sm:$0xff]  }
 0x141   :  { %3007 = vmatpush1.bf16.msra.mxu0 %v4106_v5  ;;  %2750 = vmatprep.subr.bf16.mxu1 %v4111_v6  ;;  %v4202_v5 = vld [vmem:[#allocation6 + $0xac0] ss:$8 sps:$4 sm:$0xff]   ;;  %v4207_v6 = vld [vmem:[#allocation6 + $0x4d4] ss:$8 sps:$4 sm:$0xff]  }
 0x142   :  { %3008 = vmatprep.subr.bf16.mxu0 %v4114_v7  ;;  %v4210_v7 = vld [vmem:[#allocation6 + $0xad4] ss:$8 sps:$4 sm:$0xff]  }
 0x144   :  { %2751 = vmatpush1.bf16.msra.mxu1 %v4109_v8  ;;  %v4205_v8 = vld [vmem:[#allocation6 + $0x4d0] ss:$8 sps:$4 sm:$0xff]  }
 0x145   :  { %3009 = vmatpush1.bf16.msra.mxu0 %v4112_v9  ;;  %2752 = vmatprep.subr.bf16.mxu1 %v4117_v10  ;;  %v4208_v9 = vld [vmem:[#allocation6 + $0xad0] ss:$8 sps:$4 sm:$0xff]   ;;  %v4213_v10 = vld [vmem:[#allocation6 + $0x4e4] ss:$8 sps:$4 sm:$0xff]  }
 0x146   :  { %3010 = vmatprep.subr.bf16.mxu0 %v4120_v11  ;;  %v4216_v11 = vld [vmem:[#allocation6 + $0xae4] ss:$8 sps:$4 sm:$0xff]  }
 0x148   :  { %2753 = vmatpush1.bf16.msra.mxu1 %v4115_v12  ;;  %v4211_v12 = vld [vmem:[#allocation6 + $0x4e0] ss:$8 sps:$4 sm:$0xff]  }
 0x149   :  { %3011 = vmatpush1.bf16.msra.mxu0 %v4118_v13  ;;  %2765 = vmatprep.subr.bf16.mxu1 %v4126_v14  ;;  %v4214_v13 = vld [vmem:[#allocation6 + $0xae0] ss:$8 sps:$4 sm:$0xff]   ;;  %v4219_v14 = vld [vmem:[#allocation6 + $0x4f4] ss:$8 sps:$4 sm:$0xff]  }
 0x14a   :  { %3023 = vmatprep.subr.bf16.mxu0 %v4132_v15  ;;  %v4222_v15 = vld [vmem:[#allocation6 + $0xaf4] ss:$8 sps:$4 sm:$0xff]  }
 0x14b   :  { %2755 = vmatmul.mubr.bf16.vlgmr.msra.gmra.mrb[0].mxu1 %v4121_v16  ;;  %v4217_v16 = vld [vmem:[#allocation6 + $0x4f0] ss:$8 sps:$4 sm:$0xff]  }
 0x14c   :  { %3013 = vmatmul.mubr.bf16.vlgmr.msra.gmra.mrb[0].mxu0 %v4127_v18  ;;  %2766 = vmatpush1.bf16.msra.mxu1 %v4124_v17  ;;  %v4220_v17 = vld [vmem:[#allocation6 + $0xaf0] ss:$8 sps:$4 sm:$0xff]   ;;  %v4228_v18 = vld [vmem:[#allocation6 + $0x504] ss:$8 sps:$4 sm:$0xff]  }
 0x14d   :  { %3024 = vmatpush1.bf16.msra.mxu0 %v4130_v19  ;;  %2767 = vmatprep.subr.bf16.mxu1 %v4135_v20  ;;  %v4234_v19 = vld [vmem:[#allocation6 + $0xb04] ss:$8 sps:$4 sm:$0xff]   ;;  %v4223_v20 = vld [vmem:[#allocation3 + $0x20] ss:$100 sps:$4 sm:$0xff]  }
 0x14e   :  { %3025 = vmatprep.subr.bf16.mxu0 %v4138_v21  ;;  %2797 = vmatprep.mubr.bf16.mxu1 %v4225_v22  ;;  %v4229_v21 = vld [vmem:[#allocation3 + $0x50] ss:$100 sps:$4 sm:$0xff]  }
 0x14f   :  { %3055 = vmatprep.mubr.bf16.mxu0 %v4231_v23  ;;  %v4226_v22 = vld [vmem:[#allocation6 + $0x500] ss:$8 sps:$4 sm:$0xff]  }
 0x150   :  { %2768 = vmatpush1.bf16.msra.mxu1 %v4133_v24  ;;  %v4232_v23 = vld [vmem:[#allocation6 + $0xb00] ss:$8 sps:$4 sm:$0xff]   ;;  %v4237_v24 = vld [vmem:[#allocation6 + $0x514] ss:$8 sps:$4 sm:$0xff]  }
 0x151   :  { %3026 = vmatpush1.bf16.msra.mxu0 %v4136_v25  ;;  %2769 = vmatprep.subr.bf16.mxu1 %v4141_v26  ;;  %v4240_v25 = vld [vmem:[#allocation6 + $0xb14] ss:$8 sps:$4 sm:$0xff]   ;;  %v4327_v26 = vld [vmem:[#allocation3 + $0x2c] ss:$100 sps:$4 sm:$0xff]  }
 0x152   :  { %3027 = vmatprep.subr.bf16.mxu0 %v4144_v27  ;;  %v4330_v27 = vld [vmem:[#allocation3 + $0x5c] ss:$100 sps:$4 sm:$0xff]  }
 0x154   :  { %2770 = vmatpush1.bf16.msra.mxu1 %v4139_v28  ;;  %v4235_v28 = vld [vmem:[#allocation6 + $0x510] ss:$8 sps:$4 sm:$0xff]  }
 0x155   :  { %3028 = vmatpush1.bf16.msra.mxu0 %v4142_v29  ;;  %2771 = vmatprep.subr.bf16.mxu1 %v4147_v30  ;;  %v4238_v29 = vld [vmem:[#allocation6 + $0xb10] ss:$8 sps:$4 sm:$0xff]   ;;  %v4243_v30 = vld [vmem:[#allocation6 + $0x524] ss:$8 sps:$4 sm:$0xff]  }
 0x156   :  { %3029 = vmatprep.subr.bf16.mxu0 %v4150_v31  ;;  %v4246_v31 = vld [vmem:[#allocation6 + $0xb24] ss:$8 sps:$4 sm:$0xff]  }
 0x158   :  { %2772 = vmatpush1.bf16.msra.mxu1 %v4145_v32  ;;  %v4241_v32 = vld [vmem:[#allocation6 + $0x520] ss:$8 sps:$4 sm:$0xff]  }
 0x159   :  { %3030 = vmatpush1.bf16.msra.mxu0 %v4148_v33  ;;  %2773 = vmatprep.subr.bf16.mxu1 %v4153_v34  ;;  %v4244_v33 = vld [vmem:[#allocation6 + $0xb20] ss:$8 sps:$4 sm:$0xff]   ;;  %v4249_v34 = vld [vmem:[#allocation6 + $0x534] ss:$8 sps:$4 sm:$0xff]  }
 0x15a   :  { %3031 = vmatprep.subr.bf16.mxu0 %v4156_v35  ;;  %v4252_v35 = vld [vmem:[#allocation6 + $0xb34] ss:$8 sps:$4 sm:$0xff]  }
 0x15c   :  { %2774 = vmatpush1.bf16.msra.mxu1 %v4151_v36  ;;  %v4247_v36 = vld [vmem:[#allocation6 + $0x530] ss:$8 sps:$4 sm:$0xff]  }
 0x15d   :  { %3032 = vmatpush1.bf16.msra.mxu0 %v4154_v37  ;;  %2775 = vmatprep.subr.bf16.mxu1 %v4159_v38  ;;  %v4250_v37 = vld [vmem:[#allocation6 + $0xb30] ss:$8 sps:$4 sm:$0xff]   ;;  %v4255_v38 = vld [vmem:[#allocation6 + $0x544] ss:$8 sps:$4 sm:$0xff]  }
 0x15e   :  { %3033 = vmatprep.subr.bf16.mxu0 %v4162_v39  ;;  %v4258_v39 = vld [vmem:[#allocation6 + $0xb44] ss:$8 sps:$4 sm:$0xff]  }
 0x160   :  { %2776 = vmatpush1.bf16.msra.mxu1 %v4157_v40  ;;  %v4253_v40 = vld [vmem:[#allocation6 + $0x540] ss:$8 sps:$4 sm:$0xff]  }
 0x161   :  { %3034 = vmatpush1.bf16.msra.mxu0 %v4160_v41  ;;  %2777 = vmatprep.subr.bf16.mxu1 %v4165_v42  ;;  %v4256_v41 = vld [vmem:[#allocation6 + $0xb40] ss:$8 sps:$4 sm:$0xff]   ;;  %v4261_v42 = vld [vmem:[#allocation6 + $0x554] ss:$8 sps:$4 sm:$0xff]  }
 0x162   :  { %3035 = vmatprep.subr.bf16.mxu0 %v4168_v43  ;;  %v4264_v43 = vld [vmem:[#allocation6 + $0xb54] ss:$8 sps:$4 sm:$0xff]  }
 0x164   :  { %2778 = vmatpush1.bf16.msra.mxu1 %v4163_v44  ;;  %v4259_v44 = vld [vmem:[#allocation6 + $0x550] ss:$8 sps:$4 sm:$0xff]  }
 0x165   :  { %3036 = vmatpush1.bf16.msra.mxu0 %v4166_v45  ;;  %2779 = vmatprep.subr.bf16.mxu1 %v4171_v46  ;;  %v4262_v45 = vld [vmem:[#allocation6 + $0xb50] ss:$8 sps:$4 sm:$0xff]   ;;  %v4267_v46 = vld [vmem:[#allocation6 + $0x564] ss:$8 sps:$4 sm:$0xff]  }
 0x166   :  { %3037 = vmatprep.subr.bf16.mxu0 %v4174_v47  ;;  %v4270_v47 = vld [vmem:[#allocation6 + $0xb64] ss:$8 sps:$4 sm:$0xff]  }
 0x168   :  { %2780 = vmatpush1.bf16.msra.mxu1 %v4169_v48  ;;  %v4265_v48 = vld [vmem:[#allocation6 + $0x560] ss:$8 sps:$4 sm:$0xff]  }
 0x169   :  { %3038 = vmatpush1.bf16.msra.mxu0 %v4172_v49  ;;  %2781 = vmatprep.subr.bf16.mxu1 %v4177_v50  ;;  %v4268_v49 = vld [vmem:[#allocation6 + $0xb60] ss:$8 sps:$4 sm:$0xff]   ;;  %v4273_v50 = vld [vmem:[#allocation6 + $0x574] ss:$8 sps:$4 sm:$0xff]  }
 0x16a   :  { %3039 = vmatprep.subr.bf16.mxu0 %v4180_v51  ;;  %v4276_v51 = vld [vmem:[#allocation6 + $0xb74] ss:$8 sps:$4 sm:$0xff]  }
 0x16c   :  { %2782 = vmatpush1.bf16.msra.mxu1 %v4175_v52  ;;  %v4271_v52 = vld [vmem:[#allocation6 + $0x570] ss:$8 sps:$4 sm:$0xff]  }
 0x16d   :  { %3040 = vmatpush1.bf16.msra.mxu0 %v4178_v53  ;;  %2783 = vmatprep.subr.bf16.mxu1 %v4183_v54  ;;  %v4274_v53 = vld [vmem:[#allocation6 + $0xb70] ss:$8 sps:$4 sm:$0xff]   ;;  %v4279_v54 = vld [vmem:[#allocation6 + $0x584] ss:$8 sps:$4 sm:$0xff]  }
 0x16e   :  { %3041 = vmatprep.subr.bf16.mxu0 %v4186_v55  ;;  %v4282_v55 = vld [vmem:[#allocation6 + $0xb84] ss:$8 sps:$4 sm:$0xff]  }
 0x170   :  { %2784 = vmatpush1.bf16.msra.mxu1 %v4181_v56  ;;  %v4277_v56 = vld [vmem:[#allocation6 + $0x580] ss:$8 sps:$4 sm:$0xff]  }
 0x171   :  { %3042 = vmatpush1.bf16.msra.mxu0 %v4184_v57  ;;  %2785 = vmatprep.subr.bf16.mxu1 %v4189_v58  ;;  %v4280_v57 = vld [vmem:[#allocation6 + $0xb80] ss:$8 sps:$4 sm:$0xff]   ;;  %v4285_v58 = vld [vmem:[#allocation6 + $0x594] ss:$8 sps:$4 sm:$0xff]  }
 0x172   :  { %3043 = vmatprep.subr.bf16.mxu0 %v4192_v59  ;;  %v4288_v59 = vld [vmem:[#allocation6 + $0xb94] ss:$8 sps:$4 sm:$0xff]  }
 0x174   :  { %2786 = vmatpush1.bf16.msra.mxu1 %v4187_v60  ;;  %v4283_v60 = vld [vmem:[#allocation6 + $0x590] ss:$8 sps:$4 sm:$0xff]  }
 0x175   :  { %3044 = vmatpush1.bf16.msra.mxu0 %v4190_v61  ;;  %2787 = vmatprep.subr.bf16.mxu1 %v4195_v62  ;;  %v4286_v61 = vld [vmem:[#allocation6 + $0xb90] ss:$8 sps:$4 sm:$0xff]   ;;  %v4291_v62 = vld [vmem:[#allocation6 + $0x5a4] ss:$8 sps:$4 sm:$0xff]  }
 0x176   :  { %3045 = vmatprep.subr.bf16.mxu0 %v4198_v63  ;;  %v4294_v63 = vld [vmem:[#allocation6 + $0xba4] ss:$8 sps:$4 sm:$0xff]  }
 0x178   :  { %2788 = vmatpush1.bf16.msra.mxu1 %v4193_v0  ;;  %v4289_v0 = vld [vmem:[#allocation6 + $0x5a0] ss:$8 sps:$4 sm:$0xff]  }
 0x179   :  { %3046 = vmatpush1.bf16.msra.mxu0 %v4196_v1  ;;  %2789 = vmatprep.subr.bf16.mxu1 %v4201_v2  ;;  %v4292_v1 = vld [vmem:[#allocation6 + $0xba0] ss:$8 sps:$4 sm:$0xff]   ;;  %v4297_v2 = vld [vmem:[#allocation6 + $0x5b4] ss:$8 sps:$4 sm:$0xff]  }
 0x17a   :  { %3047 = vmatprep.subr.bf16.mxu0 %v4204_v3  ;;  %v4300_v3 = vld [vmem:[#allocation6 + $0xbb4] ss:$8 sps:$4 sm:$0xff]  }
 0x17c   :  { %2790 = vmatpush1.bf16.msra.mxu1 %v4199_v4  ;;  %v4295_v4 = vld [vmem:[#allocation6 + $0x5b0] ss:$8 sps:$4 sm:$0xff]  }
 0x17d   :  { %3048 = vmatpush1.bf16.msra.mxu0 %v4202_v5  ;;  %2791 = vmatprep.subr.bf16.mxu1 %v4207_v6  ;;  %v4298_v5 = vld [vmem:[#allocation6 + $0xbb0] ss:$8 sps:$4 sm:$0xff]   ;;  %v4303_v6 = vld [vmem:[#allocation6 + $0x5c4] ss:$8 sps:$4 sm:$0xff]  }
 0x17e   :  { %3049 = vmatprep.subr.bf16.mxu0 %v4210_v7  ;;  %v4306_v7 = vld [vmem:[#allocation6 + $0xbc4] ss:$8 sps:$4 sm:$0xff]  }
 0x180   :  { %2792 = vmatpush1.bf16.msra.mxu1 %v4205_v8  ;;  %v4301_v8 = vld [vmem:[#allocation6 + $0x5c0] ss:$8 sps:$4 sm:$0xff]  }
 0x181   :  { %3050 = vmatpush1.bf16.msra.mxu0 %v4208_v9  ;;  %2793 = vmatprep.subr.bf16.mxu1 %v4213_v10  ;;  %v4304_v9 = vld [vmem:[#allocation6 + $0xbc0] ss:$8 sps:$4 sm:$0xff]   ;;  %v4309_v10 = vld [vmem:[#allocation6 + $0x5d4] ss:$8 sps:$4 sm:$0xff]  }
 0x182   :  { %3051 = vmatprep.subr.bf16.mxu0 %v4216_v11  ;;  %v4312_v11 = vld [vmem:[#allocation6 + $0xbd4] ss:$8 sps:$4 sm:$0xff]  }
 0x184   :  { %2794 = vmatpush1.bf16.msra.mxu1 %v4211_v12  ;;  %v4307_v12 = vld [vmem:[#allocation6 + $0x5d0] ss:$8 sps:$4 sm:$0xff]  }
 0x185   :  { %3052 = vmatpush1.bf16.msra.mxu0 %v4214_v13  ;;  %2795 = vmatprep.subr.bf16.mxu1 %v4219_v14  ;;  %v4310_v13 = vld [vmem:[#allocation6 + $0xbd0] ss:$8 sps:$4 sm:$0xff]   ;;  %v4315_v14 = vld [vmem:[#allocation6 + $0x5e4] ss:$8 sps:$4 sm:$0xff]  }
 0x186   :  { %3053 = vmatprep.subr.bf16.mxu0 %v4222_v15  ;;  %v4318_v15 = vld [vmem:[#allocation6 + $0xbe4] ss:$8 sps:$4 sm:$0xff]  }
 0x188   :  { %2796 = vmatpush1.bf16.msra.mxu1 %v4217_v16  ;;  %v4313_v16 = vld [vmem:[#allocation6 + $0x5e0] ss:$8 sps:$4 sm:$0xff]  }
 0x189   :  { %3054 = vmatpush1.bf16.msra.mxu0 %v4220_v17  ;;  %2808 = vmatprep.subr.bf16.mxu1 %v4228_v18  ;;  %v4316_v17 = vld [vmem:[#allocation6 + $0xbe0] ss:$8 sps:$4 sm:$0xff]   ;;  %v4321_v18 = vld [vmem:[#allocation6 + $0x5f4] ss:$8 sps:$4 sm:$0xff]  }
 0x18a   :  { %3066 = vmatprep.subr.bf16.mxu0 %v4234_v19  ;;  %v4324_v19 = vld [vmem:[#allocation6 + $0xbf4] ss:$8 sps:$4 sm:$0xff]  }
 0x18b   :  { %2798 = vmatmul.mubr.bf16.vlgmr.msra.gmra.mrb[0].mxu1 %v4223_v20  ;;  %v4319_v20 = vld [vmem:[#allocation6 + $0x5f0] ss:$8 sps:$4 sm:$0xff]  }
 0x18c   :  { %3056 = vmatmul.mubr.bf16.vlgmr.msra.gmra.mrb[0].mxu0 %v4229_v21  ;;  %2809 = vmatpush1.bf16.msra.mxu1 %v4226_v22  ;;  %v4322_v21 = vld [vmem:[#allocation6 + $0xbf0] ss:$8 sps:$4 sm:$0xff]   ;;  %v4333_v22 = vld [vmem:[#allocation6 + $0xc04] ss:$8 sps:$4 sm:$0xff]  }
 0x18d   :  { %3067 = vmatpush1.bf16.msra.mxu0 %v4232_v23  ;;  %2810 = vmatprep.subr.bf16.mxu1 %v4237_v24  ;;  %v4325_v23 = vld [vmem:[#allocation3 + $0x28] ss:$100 sps:$4 sm:$0xff]   ;;  %v4328_v24 = vld [vmem:[#allocation3 + $0x58] ss:$100 sps:$4 sm:$0xff]  }
 0x18e   :  { %3068 = vmatprep.subr.bf16.mxu0 %v4240_v25  ;;  %2840 = vmatprep.mubr.bf16.mxu1 %v4327_v26  ;;  %v4331_v25 = vld [vmem:[#allocation6 + $0xc00] ss:$8 sps:$4 sm:$0xff]   ;;  %v4336_v26 = vld [vmem:[#allocation6 + $0xc14] ss:$8 sps:$4 sm:$0xff]  }
 0x18f   :  { %3098 = vmatprep.mubr.bf16.mxu0 %v4330_v27  ;;  %v4334_v27 = vld [vmem:[#allocation6 + $0xc10] ss:$8 sps:$4 sm:$0xff]  }
 0x190   :  { %2811 = vmatpush1.bf16.msra.mxu1 %v4235_v28  ;;  %v4478_v28 = vmov 0  }
 0x191   :  { %3069 = vmatpush1.bf16.msra.mxu0 %v4238_v29  ;;  %2812 = vmatprep.subr.bf16.mxu1 %v4243_v30  ;;  %v4339_v29 = vld [vmem:[#allocation6 + $0xc24] ss:$8 sps:$4 sm:$0xff]   ;;  %v4337_v30 = vld [vmem:[#allocation6 + $0xc20] ss:$8 sps:$4 sm:$0xff]  }
 0x192   :  { %3070 = vmatprep.subr.bf16.mxu0 %v4246_v31  ;;  %v4342_v31 = vld [vmem:[#allocation6 + $0xc34] ss:$8 sps:$4 sm:$0xff]  }
 0x194   :  { %2813 = vmatpush1.bf16.msra.mxu1 %v4241_v32  ;;  %v4340_v32 = vld [vmem:[#allocation6 + $0xc30] ss:$8 sps:$4 sm:$0xff]  }
 0x195   :  { %3071 = vmatpush1.bf16.msra.mxu0 %v4244_v33  ;;  %2814 = vmatprep.subr.bf16.mxu1 %v4249_v34  ;;  %v4343_v33 = vld [vmem:[#allocation3 + $0x60] ss:$100 sps:$4 sm:$0xff]   ;;  %v494_v34 = vlaneseq }
 0x196   :  { %3072 = vmatprep.subr.bf16.mxu0 %v4252_v35 }
 0x198   :  { %2815 = vmatpush1.bf16.msra.mxu1 %v4247_v36 }
 0x199   :  { %3073 = vmatpush1.bf16.msra.mxu0 %v4250_v37  ;;  %2816 = vmatprep.subr.bf16.mxu1 %v4255_v38  ;;  %v4558_v38 = vshrl.u32 %v494_v34, 7 }
 0x19a   :  { %3074 = vmatprep.subr.bf16.mxu0 %v4258_v39 }
 0x19c   :  { %2817 = vmatpush1.bf16.msra.mxu1 %v4253_v40  ;;  %v496_v40 = vsub.s32 0, %v4558_v38 }
 0x19d   :  { %3075 = vmatpush1.bf16.msra.mxu0 %v4256_v41  ;;  %2818 = vmatprep.subr.bf16.mxu1 %v4261_v42  ;;  %v492_v41 = vld [vmem:[#allocation8] sm:$0x3]  ;;  %v500_v42 = vsub.s32 1, %v4558_v38 }
 0x19e   :  { %3076 = vmatprep.subr.bf16.mxu0 %v4264_v43  ;;  %v497_v43 = vrot.slane %v492_v41, %v496_v40 }
 0x1a0   :  { %2819 = vmatpush1.bf16.msra.mxu1 %v4259_v44  ;;  %v501_v44 = vrot.slane %v492_v41, %v500_v42 }
 0x1a1   :  { %3077 = vmatpush1.bf16.msra.mxu0 %v4262_v45  ;;  %2820 = vmatprep.subr.bf16.mxu1 %v4267_v46 }
 0x1a2   :  { %3078 = vmatprep.subr.bf16.mxu0 %v4270_v47 }
 0x1a4   :  { %2821 = vmatpush1.bf16.msra.mxu1 %v4265_v48  ;;  %v3160_v48 = vld [vmem:[#allocation9] sm:$0x3] }
 0x1a5   :  { %3079 = vmatpush1.bf16.msra.mxu0 %v4268_v49  ;;  %2822 = vmatprep.subr.bf16.mxu1 %v4273_v50 }
 0x1a6   :  { %3080 = vmatprep.subr.bf16.mxu0 %v4276_v51 }
 0x1a8   :  { %2823 = vmatpush1.bf16.msra.mxu1 %v4271_v52 }
 0x1a9   :  { %3081 = vmatpush1.bf16.msra.mxu0 %v4274_v53  ;;  %2824 = vmatprep.subr.bf16.mxu1 %v4279_v54 }
 0x1aa   :  { %3082 = vmatprep.subr.bf16.mxu0 %v4282_v55 }
 0x1ac   :  { %2825 = vmatpush1.bf16.msra.mxu1 %v4277_v56 }
 0x1ad   :  { %3083 = vmatpush1.bf16.msra.mxu0 %v4280_v57  ;;  %2826 = vmatprep.subr.bf16.mxu1 %v4285_v58  ;;  %v3165_v58 = vrot.slane %v3160_v48, %v496_v40 }
 0x1ae   :  { %3084 = vmatprep.subr.bf16.mxu0 %v4288_v59 }
 0x1b0   :  { %2827 = vmatpush1.bf16.msra.mxu1 %v4283_v60 }
 0x1b1   :  { %3085 = vmatpush1.bf16.msra.mxu0 %v4286_v61  ;;  %2828 = vmatprep.subr.bf16.mxu1 %v4291_v62  ;;  %v3169_v61 = vrot.slane %v3160_v48, %v500_v42 }
 0x1b2   :  { %3086 = vmatprep.subr.bf16.mxu0 %v4294_v63 }
 0x1b4   :  { %2829 = vmatpush1.bf16.msra.mxu1 %v4289_v0 }
 0x1b5   :  { %3087 = vmatpush1.bf16.msra.mxu0 %v4292_v1  ;;  %2830 = vmatprep.subr.bf16.mxu1 %v4297_v2 }
 0x1b6   :  { %3088 = vmatprep.subr.bf16.mxu0 %v4300_v3 }
 0x1b8   :  { %2831 = vmatpush1.bf16.msra.mxu1 %v4295_v4 }
 0x1b9   :  { %3089 = vmatpush1.bf16.msra.mxu0 %v4298_v5  ;;  %2832 = vmatprep.subr.bf16.mxu1 %v4303_v6 }
 0x1ba   :  { %3090 = vmatprep.subr.bf16.mxu0 %v4306_v7 }
 0x1bc   :  { %2833 = vmatpush1.bf16.msra.mxu1 %v4301_v8 }
 0x1bd   :  { %3091 = vmatpush1.bf16.msra.mxu0 %v4304_v9  ;;  %2834 = vmatprep.subr.bf16.mxu1 %v4309_v10  ;;  %v3183_v10 = vstv %s4583_s4  ;;  %s4479_s4 = smov [#allocation11]  }
 0x1be   :  { %3092 = vmatprep.subr.bf16.mxu0 %v4312_v11  ;;  %s3228_s17 = sshll.u32 %s4479_s4, 4  ;;  %s3229_s17 = int_to_ptr.vmem [resolvable:$true] %s3228_s17 }
 0x1bf   :  { %s4440_s18 = scalar_lea.vmem %s3229_s17, 16  ;;  %s4444_s19 = scalar_lea.vmem %s3229_s17, 32 }
 0x1c0   :  { %2835 = vmatpush1.bf16.msra.mxu1 %v4307_v12  ;;  %p4441_p4 = scmp.ne.s32.totalorder %s3229_s17, %s4440_s18  ;;  %p4445_p5 = scmp.lt.s32.totalorder %s3229_s17, %s3229_s17 }
 0x1c1   :  { %3093 = vmatpush1.bf16.msra.mxu0 %v4310_v13  ;;  %2836 = vmatprep.subr.bf16.mxu1 %v4315_v14  ;;  %p4446_p6 = scmp.lt.s32.totalorder %s4444_s19, %s4440_s18 }
 0x1c2   :  { %3094 = vmatprep.subr.bf16.mxu0 %v4318_v15 }
 0x1c3   :  { %p4447_p7 = por %p4446_p6, %p4445_p5 }
 0x1c4   :  { %2837 = vmatpush1.bf16.msra.mxu1 %v4313_v16 }
 0x1c5   :  { %3095 = vmatpush1.bf16.msra.mxu0 %v4316_v17  ;;  %2838 = vmatprep.subr.bf16.mxu1 %v4321_v18  ;;  %p4448_p8 = pnand %p4447_p7, %p4441_p4 }
 0x1c6   :  { %3096 = vmatprep.subr.bf16.mxu0 %v4324_v19 }
 0x1c8   :  { %2839 = vmatpush1.bf16.msra.mxu1 %v4319_v20 }
 0x1c9   :  { %3097 = vmatpush1.bf16.msra.mxu0 %v4322_v21 }
 0x1ca   :  { %3109 = vmatprep.subr.bf16.mxu0 %v4333_v22 }
 0x1cb   :  { %2841 = vmatmul.mubr.bf16.vlgmr.msra.gmra.mrb[0].mxu1 %v4325_v23 }
 0x1cc   :  { %3099 = vmatmul.mubr.bf16.vlgmr.msra.gmra.mrb[0].mxu0 %v4328_v24 }
 0x1cd   :  { %3110 = vmatpush1.bf16.msra.mxu0 %v4331_v25  ;;  %3141 = vmatprep.mubr.bf16.mxu0 %v4478_v28  ;;  %v3207_v25 = vand.u32 127, %v494_v34 }
 0x1ce   :  { %3111 = vmatprep.subr.bf16.mxu0 %v4336_v26 }
 0x1cf   :  { %v3212_v26 = vadd.s32 4294967288, %v3207_v25 }
 0x1d1   :  { %3112 = vmatpush1.bf16.msra.mxu0 %v4334_v27 }
 0x1d2   :  { %3113 = vmatprep.subr.bf16.mxu0 %v4339_v29  ;;  %v3210_v29 = vsub.s32 %v3207_v25, %v4558_v38 }
 0x1d5   :  { %3114 = vmatpush1.bf16.msra.mxu0 %v4337_v30 }
 0x1d6   :  { %3115 = vmatprep.subr.bf16.mxu0 %v4342_v31  ;;  %v3215_v31 = vsub.s32 %v3212_v26, %v4558_v38 }
 0x1d9   :  { %3116 = vmatpush1.bf16.msra.mxu0 %v4340_v32 }
 0x1dc   :  { %3656 = vmatmul.mubr.msk.bf16.vlgmr.msra.gmra.mrb[0].mxu0 %vm2589_vm0, %v4343_v33 }
 0x29e   :  { %v2842_v35 = vpop.f32.mrb[0].mxu1 }
 0x29f   :  { %v2844_v36 = vpop.f32.mrb[1].mxu1  ;;  %v3657_v45 = vadd.f32 %v2842_v35, %v497_v43 }
 0x2a0   :  { %v2846_v37 = vpop.f32.mrb[2].mxu1  ;;  %v3659_v46 = vadd.f32 %v2844_v36, %v501_v44 }
 0x2a1   :  { %v2848_v39 = vpop.f32.mrb[3].mxu1  ;;  %v3661_v49 = vadd.f32 %v2846_v37, %v497_v43 }
 0x2a2   :  { %v3663_v52 = vadd.f32 %v2848_v39, %v501_v44 }
 0x2af   :  { %v3143_v47 = vpop.f32.mrb[0].mxu0 }
 0x2b0   :  { %v3658_v50 = vadd.f32 %v3657_v45, %v3143_v47  ;;  %v3145_v51 = vpop.f32.mrb[1].mxu0 }
 0x2b1   :  { %v3660_v53 = vadd.f32 %v3659_v46, %v3145_v51  ;;  %v3147_v54 = vpop.f32.mrb[2].mxu0 }
 0x2b2   :  { %v3152_v55 = vmul.f32 0.2, %v3658_v50  ;;  %v3662_v56 = vadd.f32 %v3661_v49, %v3147_v54  ;;  %v3149_v57 = vpop.f32.mrb[3].mxu0 }
 0x2b3   :  { %v3153_v59 = vmul.f32 0.2, %v3660_v53  ;;  %v3664_v60 = vadd.f32 %v3663_v52, %v3149_v57 }
 0x2b4   :  { %v3156_v62 = vmax.f32 %v3658_v50, %v3152_v55  ;;  %v3154_v63 = vmul.f32 0.2, %v3662_v56 }
 0x2b5   :  { %v3157_v0 = vmax.f32 %v3660_v53, %v3153_v59  ;;  %v3155_v1 = vmul.f32 0.2, %v3664_v60 }
 0x2b6   :  { %v3158_v2 = vmax.f32 %v3662_v56, %v3154_v63  ;;  %v3172_v3 = vmul.f32 %v3165_v58, %v3156_v62 }
 0x2b7   :  { %v3159_v4 = vmax.f32 %v3664_v60, %v3155_v1  ;;  %v3173_v5 = vmul.f32 %v3169_v61, %v3157_v0 }
 0x2b8   :  { %v3174_v6 = vmul.f32 %v3165_v58, %v3158_v2 }
 0x2b9   :  { %v3176_v7 = vadd.f32 %v3173_v5, %v3172_v3  ;;  %v3175_v8 = vmul.f32 %v3169_v61, %v3159_v4 }
 0x2bb   :  { %3177 = vadd.xlane.f32.xlu0 %v3176_v7  ;;  %v3179_v9 = vadd.f32 %v3175_v8, %v3174_v6 }
 0x2bf   :  { %3180 = vadd.xlane.f32.xlu0 %v3179_v9 }
 0x348   :  { %v3178_v11 = vpop.xlane.xlu0 %3177 }
 0x349   :  { %v3184_v12 = vadd.f32 %v3183_v10, %v3178_v11 }
 0x34b   :  { %v3186_v13 = vand.u32 2147483647, %v3184_v12  ;;  %vm3194_vm1 = vcmp.ge.f32.partialorder %v3184_v12, 0.0 }
 0x34c   :  { %v3181_v14 = vpop.xlane.xlu0 %3180 }
 0x34d   :  { %v3188_v15 = vsub.f32 0.0, %v3186_v13  ;;  %v3185_v16 = vadd.f32 %v3183_v10, %v3181_v14 }
 0x34f   :  { %v3190_v17 = vmul.f32 1.442695, %v3188_v15  ;;  %v3187_v18 = vand.u32 2147483647, %v3185_v16  ;;  %vm3195_vm2 = vcmp.ge.f32.partialorder %v3185_v16, 0.0 }
 0x351   :  { %4344 = vpow2.f32 %v3190_v17  ;;  %v3189_v19 = vsub.f32 0.0, %v3187_v18 }
 0x353   :  { %v3192_v20 = vmul.f32 1.442695, %v3189_v19 }
 0x355   :  { %4346 = vpow2.f32 %v3192_v20 }
 0x35b   :  { %v4345_v21 = vpop.eup %4344 }
 0x35c   :  { %v3198_v22 = vadd.f32 1.0, %v4345_v21  ;;  %v3196_v28 = vsel %vm3194_vm1, 1.0, %v4345_v21 }
 0x35e   :  { %4348 = vrcp.f32 %v3198_v22 }
 0x35f   :  { %v4347_v23 = vpop.eup %4346 }
 0x360   :  { %v3199_v24 = vadd.f32 1.0, %v4347_v23  ;;  %v3197_v33 = vsel %vm3195_vm2, 1.0, %v4347_v23 }
 0x362   :  { %4350 = vrcp.f32 %v3199_v24 }
 0x368   :  { %v4349_v27 = vpop.eup %4348 }
 0x369   :  { %v3201_v30 = vmul.f32 %v4349_v27, %v3196_v28 }
 0x36b   :  { %v3211_v36 = vrot.slane %v3201_v30, %v3210_v29 }
 0x36c   :  { %v4351_v32 = vpop.eup %4350 }
 0x36d   :  { %v3203_v35 = vmul.f32 %v4351_v32, %v3197_v33 }
 0x36f   :  { %v3216_v37 = vrot.slane %v3203_v35, %v3215_v31 }
 0x371   :  { %v3218_v34 = vsel %vm3217_vm3, %v3216_v37, %v3211_v36 }
 0x372   :  { %3221 = vst.msk [vmem:[#allocation11] sm:$0x1] %vm3220_vm4, %v3218_v34 }
 0x373   :  { %4451 = shalt.err (!%p4448_p8)
}
 0x374   :  { %s4452_s22 = scalar_lea.hbm %s4584_s5, 16 }
 0x375   :  { %p4453_p9 = scmp.ne.s32.totalorder %s4584_s5, %s4452_s22  ;;  %p4456_p10 = scmp.lt.u32.totalorder %s4452_s22, %s4584_s5 }
 0x377   :  { %p4458_p11 = pnand %p4456_p10, %p4453_p9 }
 0x379   :  { %4461 = shalt.err (!%p4458_p11)
}
 0x37a   :  { %3231 = dma.vmem_to_hbm [thread:$0]  %s3229_s17, 16, %s4584_s5, [#allocation5]  }
 0x37b   :  { %4468 = dma.done.wait [#allocation5], 16  }
 0x37c   :  { %4469 = vsyncadd [#allocation5], 4294967280 }
 0x37d   :  { %3235 = vsyncpa [#allocation4], 1 }
 0x37e   :  { %3236 = vsyncpa [#allocation7], 1 }
 0x37f   :  { %3237 = vsyncpa [#allocation10], 1 }
 0x380   :  { %3238 = vsyncpa [#allocation5], 1 }

</bundles_post_ra>
